<compile_context>
chip_gen: v7x
topology: tpu7x:2x2x1
jax: 0.10.0
libtpu: 0.0.40
codegen_flags: <defaults>
</compile_context>

<pallas_src>
import functools

import jax
import jax.numpy as jnp
import numpy as np
from jax.experimental import pallas as pl
from jax.experimental.pallas import tpu as pltpu


# ----------------------------- fused Pallas kernel ---------------------------


def fused_depth_lstm_kernel(x_ref, h0_ref, c0_ref, wih0_t_ref, b_all_ref,
                            wblk_ref, lin_wt_ref, lin_b_ref,
                            y_ref, hN_ref, cN_ref, act_ref,
                            *, hidden, num_layers, seq_len, batch):
    """All LSTM layers (wavefronted, fully unrolled) + final Linear, fused.

    Inputs : x (T*B, D) time-major rows, h0/c0 (L, B, H),
             wih0_t (D, 4H), b_all (1, L*4H), wblk (L*H, L*4H),
             lin_wt (H, J), lin_b (1, J)
    Outputs: y (T*B, J), h_n (L, B, H), c_n (L, B, H)
    Scratch: act (T*B, H) — last layer's output sequence for the Linear.
    """
    H = hidden
    L = num_layers
    T = seq_len
    B = batch

    # Hoisted loads (weights / biases stay resident in vregs for all steps).
    wblk = wblk_ref[...]                       # (L*H, L*4H) block recurrence weight
    b_all = b_all_ref[...]                     # (1, L*4H)   all (b_ih + b_hh) stacked

    # Layer-0 input projection for ALL timesteps: ONE hoisted MXU matmul.
    # Kept as values (2 vregs) — no VMEM round trip; per-step slices are static.
    xproj = jnp.dot(x_ref[...], wih0_t_ref[...],
                    preferred_element_type=jnp.float32)          # (T*B, 4H)
    xproj_t = [xproj[t * B:(t + 1) * B, :] for t in range(T)]    # each (B, 4H)

    # Per-layer carries (Python lists; loop is fully unrolled at trace time).
    h = [h0_ref[l] for l in range(L)]          # each (B, H)
    c = [c0_ref[l] for l in range(L)]

    # Wavefront over (layer, time) diagonals: step s handles layer l at
    # time t = s - l.  T + L - 1 serial steps instead of T * L.
    for s in range(T + L - 1):
        # LHS = [h_0, h_1, ..., h_{L-1}] carries from the previous diagonal.
        lhs = h[0] if L == 1 else jnp.concatenate(h, axis=1)     # (B, L*H)
        # One MXU matmul produces every active layer's gate pre-activations,
        # lane-dense; all biases folded in with a single broadcast add.
        gates_all = (jnp.dot(lhs, wblk, preferred_element_type=jnp.float32)
                     + b_all)                                     # (B, L*4H)

        for l in range(L):
            t = s - l
            if not (0 <= t < T):              # wavefront boundary (peeled statically)
                continue
            g = gates_all[:, l * 4 * H:(l + 1) * 4 * H]           # (B, 4H)
            if l == 0:
                g = g + xproj_t[t]            # x_t @ Wih0^T (precomputed)
            # ONE full-vreg sigmoid (i, f, o sliced from it); tanh only on the
            # H-lane g slice.  (EUP is a single slot on the serial chain.)
            sig = jax.nn.sigmoid(g)
            i_g = sig[:, 0 * H:1 * H]
            f_g = sig[:, 1 * H:2 * H]
            o_g = sig[:, 3 * H:4 * H]
            g_g = jnp.tanh(g[:, 2 * H:3 * H])
            c_new = f_g * c[l] + i_g * g_g
            h_new = o_g * jnp.tanh(c_new)
            h[l] = h_new
            c[l] = c_new
            if l == L - 1:
                # Static slice store; only the last layer's sequence is needed.
                act_ref[t * B:(t + 1) * B, :] = h_new

    for l in range(L):
        hN_ref[l] = h[l]
        cN_ref[l] = c[l]

    # Fused final Linear: one (T*B, H) x (H, J) matmul, single store.
    y_ref[...] = (jnp.dot(act_ref[...], lin_wt_ref[...],
                          preferred_element_type=jnp.float32) + lin_b_ref[...])


# ------------------------------- kernel driver -------------------------------


def depth_lstm_forward(seq, params, *, hidden_size, num_layers, num_joints,
                       state=None):
    """Mirrors DepthLSTM.forward: returns (y (B,T,J), (h_n, c_n))."""
    B, T, D = seq.shape
    H, L, J = hidden_size, num_layers, num_joints
    if state is None:
        h0 = jnp.zeros((L, B, H), jnp.float32)
        c0 = jnp.zeros((L, B, H), jnp.float32)
    else:
        h0, c0 = state

    # Time-major, flattened: rows [t*B : (t+1)*B) hold timestep t.
    x2d = jnp.swapaxes(seq, 0, 1).reshape(T * B, D).astype(jnp.float32)

    kernel = functools.partial(
        fused_depth_lstm_kernel, hidden=H, num_layers=L, seq_len=T, batch=B)

    y2d, h_n, c_n = pl.pallas_call(
        kernel,
        out_shape=(
            jax.ShapeDtypeStruct((T * B, J), jnp.float32),
            jax.ShapeDtypeStruct((L, B, H), jnp.float32),
            jax.ShapeDtypeStruct((L, B, H), jnp.float32),
        ),
        scratch_shapes=[
            pltpu.VMEM((T * B, H), jnp.float32),   # last layer's output sequence
        ],
    )(x2d, h0, c0, params["wih0_t"], params["b_all"], params["wblk"],
      params["lin_w_t"], params["lin_b2d"])

    # Rows of y2d are (t, b)-ordered; Linear is row-wise, so this equals the
    # PyTorch batch_first view(-1, H) -> Linear -> view(B, T, J) result.
    y = jnp.swapaxes(y2d.reshape(T, B, J), 0, 1)
    return y, (h_n, c_n)


# ------------------------------- parameter init ------------------------------


def init_params(key, *, hidden_size, num_layers, num_joints):
    H, L, J = hidden_size, num_layers, num_joints
    input_size = 2 * J
    k = 1.0 / np.sqrt(H)
    params = {"lstm": []}
    for layer in range(L):
        d_in = input_size if layer == 0 else H
        key, k1, k2, k3, k4 = jax.random.split(key, 5)
        wih = jax.random.uniform(k1, (4 * H, d_in), jnp.float32, -k, k)
        whh = jax.random.uniform(k2, (4 * H, H), jnp.float32, -k, k)
        bih = jax.random.uniform(k3, (4 * H,), jnp.float32, -k, k)
        bhh = jax.random.uniform(k4, (4 * H,), jnp.float32, -k, k)
        params["lstm"].append({"wih": wih, "whh": whh, "bih": bih, "bhh": bhh})
    key, k5, k6 = jax.random.split(key, 3)
    lin_w = jax.random.uniform(k5, (J, H), jnp.float32, -k, k)
    lin_b = jax.random.uniform(k6, (J,), jnp.float32, -k, k)
    params["lin_w"] = lin_w
    params["lin_b"] = lin_b

    # ---- one-time repack of the fused-kernel operands (PyTorch i|f|g|o order):
    # layer-0 input projection weight, stacked biases, and the wavefront block
    # weight  rows = [h_0 | h_1 | ... ]-segments, cols = per-layer 4H gate blocks.
    params["wih0_t"] = params["lstm"][0]["wih"].T                        # (D, 4H)
    b_all = jnp.concatenate([p["bih"] + p["bhh"] for p in params["lstm"]])
    params["b_all"] = b_all.reshape(1, L * 4 * H)                        # (1, L*4H)
    wblk = jnp.zeros((L * H, L * 4 * H), jnp.float32)
    wblk = wblk.at[0:H, 0:4 * H].set(params["lstm"][0]["whh"].T)
    for l in range(1, L):
        wblk = wblk.at[(l - 1) * H:l * H,
                       l * 4 * H:(l + 1) * 4 * H].set(params["lstm"][l]["wih"].T)
        wblk = wblk.at[l * H:(l + 1) * H,
                       l * 4 * H:(l + 1) * 4 * H].set(params["lstm"][l]["whh"].T)
    params["wblk"] = wblk                                                # (L*H, L*4H)
    params["lin_w_t"] = lin_w.T                                          # (H, J)
    params["lin_b2d"] = lin_b.reshape(1, J)
    return params


# ------------------------------ pure-JAX reference ---------------------------


def depth_lstm_reference(seq, params, *, hidden_size, num_layers, num_joints):
    B, T, _ = seq.shape
    x = seq.astype(jnp.float32)
    h_finals, c_finals = [], []
    for layer in range(num_layers):
        p = params["lstm"][layer]
        wih, whh, bih, bhh = p["wih"], p["whh"], p["bih"], p["bhh"]

        def step(carry, x_t):
            h, c = carry
            gates = x_t @ wih.T + h @ whh.T + bih + bhh
            i, f, g, o = jnp.split(gates, 4, axis=-1)
            i, f, o = jax.nn.sigmoid(i), jax.nn.sigmoid(f), jax.nn.sigmoid(o)
            g = jnp.tanh(g)
            c = f * c + i * g
            h = o * jnp.tanh(c)
            return (h, c), h

        h0 = jnp.zeros((B, hidden_size), jnp.float32)
        c0 = jnp.zeros((B, hidden_size), jnp.float32)
        (hN, cN), ys = jax.lax.scan(step, (h0, c0), jnp.swapaxes(x, 0, 1))
        x = jnp.swapaxes(ys, 0, 1)
        h_finals.append(hN)
        c_finals.append(cN)
    h_all = x.reshape(-1, hidden_size)
    y = (h_all @ params["lin_w"].T + params["lin_b"]).reshape(B, T, num_joints)
    return y, (jnp.stack(h_finals), jnp.stack(c_finals))


# ------------------------------------ main -----------------------------------


if __name__ == "__main__":
    hidden_size = 32
    num_layers = 2
    seq_len = 8
    seq_len_train = 8
    batch_size = 2
    num_joints = 4

    key = jax.random.PRNGKey(0)
    key, pkey, xkey = jax.random.split(key, 3)
    params = init_params(pkey, hidden_size=hidden_size,
                         num_layers=num_layers, num_joints=num_joints)
    seq = jax.random.normal(xkey, (batch_size, seq_len_train, 2 * num_joints),
                            jnp.float32)

    y, (h_n, c_n) = depth_lstm_forward(
        seq, params, hidden_size=hidden_size, num_layers=num_layers,
        num_joints=num_joints)
    jax.block_until_ready((y, h_n, c_n))

    y_ref, (h_ref, c_ref) = depth_lstm_reference(
        seq, params, hidden_size=hidden_size, num_layers=num_layers,
        num_joints=num_joints)

    assert y.shape == (batch_size, seq_len_train, num_joints)
    assert h_n.shape == (num_layers, batch_size, hidden_size)
    assert c_n.shape == (num_layers, batch_size, hidden_size)
    np.testing.assert_allclose(np.asarray(y), np.asarray(y_ref),
                               rtol=1e-4, atol=1e-4)
    np.testing.assert_allclose(np.asarray(h_n), np.asarray(h_ref),
                               rtol=1e-4, atol=1e-4)
    np.testing.assert_allclose(np.asarray(c_n), np.asarray(c_ref),
                               rtol=1e-4, atol=1e-4)

    print("KERNEL_OK")
</pallas_src>

<mosaic_0001>
module attributes {stable_mosaic.version = 11 : i64} {
  func.func @fused_depth_lstm_kernel(%arg0: memref<16x8xf32, #tpu.memory_space<vmem>>, %arg1: memref<2x2x32xf32, #tpu.memory_space<vmem>>, %arg2: memref<2x2x32xf32, #tpu.memory_space<vmem>>, %arg3: memref<8x128xf32, #tpu.memory_space<vmem>>, %arg4: memref<1x256xf32, #tpu.memory_space<vmem>>, %arg5: memref<64x256xf32, #tpu.memory_space<vmem>>, %arg6: memref<32x4xf32, #tpu.memory_space<vmem>>, %arg7: memref<1x4xf32, #tpu.memory_space<vmem>>, %arg8: memref<16x4xf32, #tpu.memory_space<vmem>>, %arg9: memref<2x2x32xf32, #tpu.memory_space<vmem>>, %arg10: memref<2x2x32xf32, #tpu.memory_space<vmem>>, %arg11: memref<16x32xf32, #tpu.memory_space<vmem>>) attributes {dimension_semantics = [], scalar_prefetch = 0 : i64, scratch_operands = 1 : i64, tpu.core_type = #tpu.core_type<tc>} {
    %c0 = arith.constant 0 : index
    %c0_0 = arith.constant 0 : index
    %0 = vector.load %arg5[%c0, %c0_0] : memref<64x256xf32, #tpu.memory_space<vmem>>, vector<64x256xf32>
    %c0_1 = arith.constant 0 : index
    %c0_2 = arith.constant 0 : index
    %1 = vector.load %arg4[%c0_1, %c0_2] : memref<1x256xf32, #tpu.memory_space<vmem>>, vector<1x256xf32>
    %c0_3 = arith.constant 0 : index
    %c0_4 = arith.constant 0 : index
    %2 = vector.load %arg0[%c0_3, %c0_4] : memref<16x8xf32, #tpu.memory_space<vmem>>, vector<16x8xf32>
    %c0_5 = arith.constant 0 : index
    %c0_6 = arith.constant 0 : index
    %3 = vector.load %arg3[%c0_5, %c0_6] : memref<8x128xf32, #tpu.memory_space<vmem>>, vector<8x128xf32>
    %cst = arith.constant dense<0.000000e+00> : vector<16x128xf32>
    %4 = tpu.matmul %2, %3, %cst {dimension_numbers = #tpu.dot_dimension_numbers<[1], [0], [0], [1], [0, 0, 1, 1], [], []>} : vector<16x8xf32>, vector<8x128xf32>, vector<16x128xf32> -> vector<16x128xf32>
    %5 = vector.extract_strided_slice %4 {offsets = [0, 0], sizes = [2, 128], strides = [1, 1]} : vector<16x128xf32> to vector<2x128xf32>
    %6 = vector.extract_strided_slice %4 {offsets = [2, 0], sizes = [2, 128], strides = [1, 1]} : vector<16x128xf32> to vector<2x128xf32>
    %7 = vector.extract_strided_slice %4 {offsets = [4, 0], sizes = [2, 128], strides = [1, 1]} : vector<16x128xf32> to vector<2x128xf32>
    %8 = vector.extract_strided_slice %4 {offsets = [6, 0], sizes = [2, 128], strides = [1, 1]} : vector<16x128xf32> to vector<2x128xf32>
    %9 = vector.extract_strided_slice %4 {offsets = [8, 0], sizes = [2, 128], strides = [1, 1]} : vector<16x128xf32> to vector<2x128xf32>
    %10 = vector.extract_strided_slice %4 {offsets = [10, 0], sizes = [2, 128], strides = [1, 1]} : vector<16x128xf32> to vector<2x128xf32>
    %11 = vector.extract_strided_slice %4 {offsets = [12, 0], sizes = [2, 128], strides = [1, 1]} : vector<16x128xf32> to vector<2x128xf32>
    %12 = vector.extract_strided_slice %4 {offsets = [14, 0], sizes = [2, 128], strides = [1, 1]} : vector<16x128xf32> to vector<2x128xf32>
    %c0_7 = arith.constant 0 : index
    %c0_8 = arith.constant 0 : index
    %c0_9 = arith.constant 0 : index
    %13 = vector.load %arg1[%c0_7, %c0_8, %c0_9] : memref<2x2x32xf32, #tpu.memory_space<vmem>>, vector<1x2x32xf32>
    %14 = vector.shape_cast %13 : vector<1x2x32xf32> to vector<2x32xf32>
    %c1 = arith.constant 1 : index
    %c0_10 = arith.constant 0 : index
    %c0_11 = arith.constant 0 : index
    %15 = vector.load %arg1[%c1, %c0_10, %c0_11] : memref<2x2x32xf32, #tpu.memory_space<vmem>>, vector<1x2x32xf32>
    %16 = vector.shape_cast %15 : vector<1x2x32xf32> to vector<2x32xf32>
    %c0_12 = arith.constant 0 : index
    %c0_13 = arith.constant 0 : index
    %c0_14 = arith.constant 0 : index
    %17 = vector.load %arg2[%c0_12, %c0_13, %c0_14] : memref<2x2x32xf32, #tpu.memory_space<vmem>>, vector<1x2x32xf32>
    %18 = vector.shape_cast %17 : vector<1x2x32xf32> to vector<2x32xf32>
    %c1_15 = arith.constant 1 : index
    %c0_16 = arith.constant 0 : index
    %c0_17 = arith.constant 0 : index
    %19 = vector.load %arg2[%c1_15, %c0_16, %c0_17] : memref<2x2x32xf32, #tpu.memory_space<vmem>>, vector<1x2x32xf32>
    %20 = vector.shape_cast %19 : vector<1x2x32xf32> to vector<2x32xf32>
    %21 = tpu.concatenate %14, %16 in 1 : vector<2x32xf32>, vector<2x32xf32> -> vector<2x64xf32>
    %cst_18 = arith.constant dense<0.000000e+00> : vector<2x256xf32>
    %22 = tpu.matmul %21, %0, %cst_18 {dimension_numbers = #tpu.dot_dimension_numbers<[1], [0], [0], [1], [0, 0, 1, 1], [], []>} : vector<2x64xf32>, vector<64x256xf32>, vector<2x256xf32> -> vector<2x256xf32>
    %23 = vector.broadcast %1 : vector<1x256xf32> to vector<2x256xf32>
    %24 = arith.addf %22, %23 : vector<2x256xf32>
    %25 = vector.extract_strided_slice %24 {offsets = [0, 0], sizes = [2, 128], strides = [1, 1]} : vector<2x256xf32> to vector<2x128xf32>
    %26 = arith.addf %25, %5 : vector<2x128xf32>
    %27 = arith.negf %26 : vector<2x128xf32>
    %28 = math.exp %27 : vector<2x128xf32>
    %cst_19 = arith.constant 1.000000e+00 : f32
    %29 = vector.broadcast %cst_19 : f32 to vector<2x128xf32>
    %30 = arith.addf %29, %28 : vector<2x128xf32>
    %31 = arith.divf %29, %30 : vector<2x128xf32>
    %32 = vector.extract_strided_slice %31 {offsets = [0, 0], sizes = [2, 32], strides = [1, 1]} : vector<2x128xf32> to vector<2x32xf32>
    %33 = vector.extract_strided_slice %31 {offsets = [0, 32], sizes = [2, 32], strides = [1, 1]} : vector<2x128xf32> to vector<2x32xf32>
    %34 = vector.extract_strided_slice %31 {offsets = [0, 96], sizes = [2, 32], strides = [1, 1]} : vector<2x128xf32> to vector<2x32xf32>
    %35 = vector.extract_strided_slice %26 {offsets = [0, 64], sizes = [2, 32], strides = [1, 1]} : vector<2x128xf32> to vector<2x32xf32>
    %36 = math.tanh %35 : vector<2x32xf32>
    %37 = arith.mulf %33, %18 : vector<2x32xf32>
    %38 = arith.mulf %32, %36 : vector<2x32xf32>
    %39 = arith.addf %37, %38 : vector<2x32xf32>
    %40 = math.tanh %39 : vector<2x32xf32>
    %41 = arith.mulf %34, %40 : vector<2x32xf32>
    %42 = tpu.concatenate %41, %16 in 1 : vector<2x32xf32>, vector<2x32xf32> -> vector<2x64xf32>
    %cst_20 = arith.constant dense<0.000000e+00> : vector<2x256xf32>
    %43 = tpu.matmul %42, %0, %cst_20 {dimension_numbers = #tpu.dot_dimension_numbers<[1], [0], [0], [1], [0, 0, 1, 1], [], []>} : vector<2x64xf32>, vector<64x256xf32>, vector<2x256xf32> -> vector<2x256xf32>
    %44 = vector.broadcast %1 : vector<1x256xf32> to vector<2x256xf32>
    %45 = arith.addf %43, %44 : vector<2x256xf32>
    %46 = vector.extract_strided_slice %45 {offsets = [0, 0], sizes = [2, 128], strides = [1, 1]} : vector<2x256xf32> to vector<2x128xf32>
    %47 = arith.addf %46, %6 : vector<2x128xf32>
    %48 = arith.negf %47 : vector<2x128xf32>
    %49 = math.exp %48 : vector<2x128xf32>
    %cst_21 = arith.constant 1.000000e+00 : f32
    %50 = vector.broadcast %cst_21 : f32 to vector<2x128xf32>
    %51 = arith.addf %50, %49 : vector<2x128xf32>
    %52 = arith.divf %50, %51 : vector<2x128xf32>
    %53 = vector.extract_strided_slice %52 {offsets = [0, 0], sizes = [2, 32], strides = [1, 1]} : vector<2x128xf32> to vector<2x32xf32>
    %54 = vector.extract_strided_slice %52 {offsets = [0, 32], sizes = [2, 32], strides = [1, 1]} : vector<2x128xf32> to vector<2x32xf32>
    %55 = vector.extract_strided_slice %52 {offsets = [0, 96], sizes = [2, 32], strides = [1, 1]} : vector<2x128xf32> to vector<2x32xf32>
    %56 = vector.extract_strided_slice %47 {offsets = [0, 64], sizes = [2, 32], strides = [1, 1]} : vector<2x128xf32> to vector<2x32xf32>
    %57 = math.tanh %56 : vector<2x32xf32>
    %58 = arith.mulf %54, %39 : vector<2x32xf32>
    %59 = arith.mulf %53, %57 : vector<2x32xf32>
    %60 = arith.addf %58, %59 : vector<2x32xf32>
    %61 = math.tanh %60 : vector<2x32xf32>
    %62 = arith.mulf %55, %61 : vector<2x32xf32>
    %63 = vector.extract_strided_slice %45 {offsets = [0, 128], sizes = [2, 128], strides = [1, 1]} : vector<2x256xf32> to vector<2x128xf32>
    %64 = arith.negf %63 : vector<2x128xf32>
    %65 = math.exp %64 : vector<2x128xf32>
    %cst_22 = arith.constant 1.000000e+00 : f32
    %66 = vector.broadcast %cst_22 : f32 to vector<2x128xf32>
    %67 = arith.addf %66, %65 : vector<2x128xf32>
    %68 = arith.divf %66, %67 : vector<2x128xf32>
    %69 = vector.extract_strided_slice %68 {offsets = [0, 0], sizes = [2, 32], strides = [1, 1]} : vector<2x128xf32> to vector<2x32xf32>
    %70 = vector.extract_strided_slice %68 {offsets = [0, 32], sizes = [2, 32], strides = [1, 1]} : vector<2x128xf32> to vector<2x32xf32>
    %71 = vector.extract_strided_slice %68 {offsets = [0, 96], sizes = [2, 32], strides = [1, 1]} : vector<2x128xf32> to vector<2x32xf32>
    %72 = vector.extract_strided_slice %63 {offsets = [0, 64], sizes = [2, 32], strides = [1, 1]} : vector<2x128xf32> to vector<2x32xf32>
    %73 = math.tanh %72 : vector<2x32xf32>
    %74 = arith.mulf %70, %20 : vector<2x32xf32>
    %75 = arith.mulf %69, %73 : vector<2x32xf32>
    %76 = arith.addf %74, %75 : vector<2x32xf32>
    %77 = math.tanh %76 : vector<2x32xf32>
    %78 = arith.mulf %71, %77 : vector<2x32xf32>
    %c0_23 = arith.constant 0 : index
    %c0_24 = arith.constant 0 : index
    %79 = vector.load %arg11[%c0_23, %c0_24] : memref<16x32xf32, #tpu.memory_space<vmem>>, vector<2x32xf32>
    tpu.vector_store %arg11[%c0_23, %c0_24], %78 {strides = array<i32>} : memref<16x32xf32, #tpu.memory_space<vmem>>, vector<2x32xf32>,
    %80 = tpu.concatenate %62, %78 in 1 : vector<2x32xf32>, vector<2x32xf32> -> vector<2x64xf32>
    %cst_25 = arith.constant dense<0.000000e+00> : vector<2x256xf32>
    %81 = tpu.matmul %80, %0, %cst_25 {dimension_numbers = #tpu.dot_dimension_numbers<[1], [0], [0], [1], [0, 0, 1, 1], [], []>} : vector<2x64xf32>, vector<64x256xf32>, vector<2x256xf32> -> vector<2x256xf32>
    %82 = vector.broadcast %1 : vector<1x256xf32> to vector<2x256xf32>
    %83 = arith.addf %81, %82 : vector<2x256xf32>
    %84 = vector.extract_strided_slice %83 {offsets = [0, 0], sizes = [2, 128], strides = [1, 1]} : vector<2x256xf32> to vector<2x128xf32>
    %85 = arith.addf %84, %7 : vector<2x128xf32>
    %86 = arith.negf %85 : vector<2x128xf32>
    %87 = math.exp %86 : vector<2x128xf32>
    %cst_26 = arith.constant 1.000000e+00 : f32
    %88 = vector.broadcast %cst_26 : f32 to vector<2x128xf32>
    %89 = arith.addf %88, %87 : vector<2x128xf32>
    %90 = arith.divf %88, %89 : vector<2x128xf32>
    %91 = vector.extract_strided_slice %90 {offsets = [0, 0], sizes = [2, 32], strides = [1, 1]} : vector<2x128xf32> to vector<2x32xf32>
    %92 = vector.extract_strided_slice %90 {offsets = [0, 32], sizes = [2, 32], strides = [1, 1]} : vector<2x128xf32> to vector<2x32xf32>
    %93 = vector.extract_strided_slice %90 {offsets = [0, 96], sizes = [2, 32], strides = [1, 1]} : vector<2x128xf32> to vector<2x32xf32>
    %94 = vector.extract_strided_slice %85 {offsets = [0, 64], sizes = [2, 32], strides = [1, 1]} : vector<2x128xf32> to vector<2x32xf32>
    %95 = math.tanh %94 : vector<2x32xf32>
    %96 = arith.mulf %92, %60 : vector<2x32xf32>
    %97 = arith.mulf %91, %95 : vector<2x32xf32>
    %98 = arith.addf %96, %97 : vector<2x32xf32>
    %99 = math.tanh %98 : vector<2x32xf32>
    %100 = arith.mulf %93, %99 : vector<2x32xf32>
    %101 = vector.extract_strided_slice %83 {offsets = [0, 128], sizes = [2, 128], strides = [1, 1]} : vector<2x256xf32> to vector<2x128xf32>
    %102 = arith.negf %101 : vector<2x128xf32>
    %103 = math.exp %102 : vector<2x128xf32>
    %cst_27 = arith.constant 1.000000e+00 : f32
    %104 = vector.broadcast %cst_27 : f32 to vector<2x128xf32>
    %105 = arith.addf %104, %103 : vector<2x128xf32>
    %106 = arith.divf %104, %105 : vector<2x128xf32>
    %107 = vector.extract_strided_slice %106 {offsets = [0, 0], sizes = [2, 32], strides = [1, 1]} : vector<2x128xf32> to vector<2x32xf32>
    %108 = vector.extract_strided_slice %106 {offsets = [0, 32], sizes = [2, 32], strides = [1, 1]} : vector<2x128xf32> to vector<2x32xf32>
    %109 = vector.extract_strided_slice %106 {offsets = [0, 96], sizes = [2, 32], strides = [1, 1]} : vector<2x128xf32> to vector<2x32xf32>
    %110 = vector.extract_strided_slice %101 {offsets = [0, 64], sizes = [2, 32], strides = [1, 1]} : vector<2x128xf32> to vector<2x32xf32>
    %111 = math.tanh %110 : vector<2x32xf32>
    %112 = arith.mulf %108, %76 : vector<2x32xf32>
    %113 = arith.mulf %107, %111 : vector<2x32xf32>
    %114 = arith.addf %112, %113 : vector<2x32xf32>
    %115 = math.tanh %114 : vector<2x32xf32>
    %116 = arith.mulf %109, %115 : vector<2x32xf32>
    %c2 = arith.constant 2 : index
    %c0_28 = arith.constant 0 : index
    %117 = vector.load %arg11[%c2, %c0_28] : memref<16x32xf32, #tpu.memory_space<vmem>>, vector<2x32xf32>
    tpu.vector_store %arg11[%c2, %c0_28], %116 {strides = array<i32>} : memref<16x32xf32, #tpu.memory_space<vmem>>, vector<2x32xf32>,
    %118 = tpu.concatenate %100, %116 in 1 : vector<2x32xf32>, vector<2x32xf32> -> vector<2x64xf32>
    %cst_29 = arith.constant dense<0.000000e+00> : vector<2x256xf32>
    %119 = tpu.matmul %118, %0, %cst_29 {dimension_numbers = #tpu.dot_dimension_numbers<[1], [0], [0], [1], [0, 0, 1, 1], [], []>} : vector<2x64xf32>, vector<64x256xf32>, vector<2x256xf32> -> vector<2x256xf32>
    %120 = vector.broadcast %1 : vector<1x256xf32> to vector<2x256xf32>
    %121 = arith.addf %119, %120 : vector<2x256xf32>
    %122 = vector.extract_strided_slice %121 {offsets = [0, 0], sizes = [2, 128], strides = [1, 1]} : vector<2x256xf32> to vector<2x128xf32>
    %123 = arith.addf %122, %8 : vector<2x128xf32>
    %124 = arith.negf %123 : vector<2x128xf32>
    %125 = math.exp %124 : vector<2x128xf32>
    %cst_30 = arith.constant 1.000000e+00 : f32
    %126 = vector.broadcast %cst_30 : f32 to vector<2x128xf32>
    %127 = arith.addf %126, %125 : vector<2x128xf32>
    %128 = arith.divf %126, %127 : vector<2x128xf32>
    %129 = vector.extract_strided_slice %128 {offsets = [0, 0], sizes = [2, 32], strides = [1, 1]} : vector<2x128xf32> to vector<2x32xf32>
    %130 = vector.extract_strided_slice %128 {offsets = [0, 32], sizes = [2, 32], strides = [1, 1]} : vector<2x128xf32> to vector<2x32xf32>
    %131 = vector.extract_strided_slice %128 {offsets = [0, 96], sizes = [2, 32], strides = [1, 1]} : vector<2x128xf32> to vector<2x32xf32>
    %132 = vector.extract_strided_slice %123 {offsets = [0, 64], sizes = [2, 32], strides = [1, 1]} : vector<2x128xf32> to vector<2x32xf32>
    %133 = math.tanh %132 : vector<2x32xf32>
    %134 = arith.mulf %130, %98 : vector<2x32xf32>
    %135 = arith.mulf %129, %133 : vector<2x32xf32>
    %136 = arith.addf %134, %135 : vector<2x32xf32>
    %137 = math.tanh %136 : vector<2x32xf32>
    %138 = arith.mulf %131, %137 : vector<2x32xf32>
    %139 = vector.extract_strided_slice %121 {offsets = [0, 128], sizes = [2, 128], strides = [1, 1]} : vector<2x256xf32> to vector<2x128xf32>
    %140 = arith.negf %139 : vector<2x128xf32>
    %141 = math.exp %140 : vector<2x128xf32>
    %cst_31 = arith.constant 1.000000e+00 : f32
    %142 = vector.broadcast %cst_31 : f32 to vector<2x128xf32>
    %143 = arith.addf %142, %141 : vector<2x128xf32>
    %144 = arith.divf %142, %143 : vector<2x128xf32>
    %145 = vector.extract_strided_slice %144 {offsets = [0, 0], sizes = [2, 32], strides = [1, 1]} : vector<2x128xf32> to vector<2x32xf32>
    %146 = vector.extract_strided_slice %144 {offsets = [0, 32], sizes = [2, 32], strides = [1, 1]} : vector<2x128xf32> to vector<2x32xf32>
    %147 = vector.extract_strided_slice %144 {offsets = [0, 96], sizes = [2, 32], strides = [1, 1]} : vector<2x128xf32> to vector<2x32xf32>
    %148 = vector.extract_strided_slice %139 {offsets = [0, 64], sizes = [2, 32], strides = [1, 1]} : vector<2x128xf32> to vector<2x32xf32>
    %149 = math.tanh %148 : vector<2x32xf32>
    %150 = arith.mulf %146, %114 : vector<2x32xf32>
    %151 = arith.mulf %145, %149 : vector<2x32xf32>
    %152 = arith.addf %150, %151 : vector<2x32xf32>
    %153 = math.tanh %152 : vector<2x32xf32>
    %154 = arith.mulf %147, %153 : vector<2x32xf32>
    %c4 = arith.constant 4 : index
    %c0_32 = arith.constant 0 : index
    %155 = vector.load %arg11[%c4, %c0_32] : memref<16x32xf32, #tpu.memory_space<vmem>>, vector<2x32xf32>
    tpu.vector_store %arg11[%c4, %c0_32], %154 {strides = array<i32>} : memref<16x32xf32, #tpu.memory_space<vmem>>, vector<2x32xf32>,
    %156 = tpu.concatenate %138, %154 in 1 : vector<2x32xf32>, vector<2x32xf32> -> vector<2x64xf32>
    %cst_33 = arith.constant dense<0.000000e+00> : vector<2x256xf32>
    %157 = tpu.matmul %156, %0, %cst_33 {dimension_numbers = #tpu.dot_dimension_numbers<[1], [0], [0], [1], [0, 0, 1, 1], [], []>} : vector<2x64xf32>, vector<64x256xf32>, vector<2x256xf32> -> vector<2x256xf32>
    %158 = vector.broadcast %1 : vector<1x256xf32> to vector<2x256xf32>
    %159 = arith.addf %157, %158 : vector<2x256xf32>
    %160 = vector.extract_strided_slice %159 {offsets = [0, 0], sizes = [2, 128], strides = [1, 1]} : vector<2x256xf32> to vector<2x128xf32>
    %161 = arith.addf %160, %9 : vector<2x128xf32>
    %162 = arith.negf %161 : vector<2x128xf32>
    %163 = math.exp %162 : vector<2x128xf32>
    %cst_34 = arith.constant 1.000000e+00 : f32
    %164 = vector.broadcast %cst_34 : f32 to vector<2x128xf32>
    %165 = arith.addf %164, %163 : vector<2x128xf32>
    %166 = arith.divf %164, %165 : vector<2x128xf32>
    %167 = vector.extract_strided_slice %166 {offsets = [0, 0], sizes = [2, 32], strides = [1, 1]} : vector<2x128xf32> to vector<2x32xf32>
    %168 = vector.extract_strided_slice %166 {offsets = [0, 32], sizes = [2, 32], strides = [1, 1]} : vector<2x128xf32> to vector<2x32xf32>
    %169 = vector.extract_strided_slice %166 {offsets = [0, 96], sizes = [2, 32], strides = [1, 1]} : vector<2x128xf32> to vector<2x32xf32>
    %170 = vector.extract_strided_slice %161 {offsets = [0, 64], sizes = [2, 32], strides = [1, 1]} : vector<2x128xf32> to vector<2x32xf32>
    %171 = math.tanh %170 : vector<2x32xf32>
    %172 = arith.mulf %168, %136 : vector<2x32xf32>
    %173 = arith.mulf %167, %171 : vector<2x32xf32>
    %174 = arith.addf %172, %173 : vector<2x32xf32>
    %175 = math.tanh %174 : vector<2x32xf32>
    %176 = arith.mulf %169, %175 : vector<2x32xf32>
    %177 = vector.extract_strided_slice %159 {offsets = [0, 128], sizes = [2, 128], strides = [1, 1]} : vector<2x256xf32> to vector<2x128xf32>
    %178 = arith.negf %177 : vector<2x128xf32>
    %179 = math.exp %178 : vector<2x128xf32>
    %cst_35 = arith.constant 1.000000e+00 : f32
    %180 = vector.broadcast %cst_35 : f32 to vector<2x128xf32>
    %181 = arith.addf %180, %179 : vector<2x128xf32>
    %182 = arith.divf %180, %181 : vector<2x128xf32>
    %183 = vector.extract_strided_slice %182 {offsets = [0, 0], sizes = [2, 32], strides = [1, 1]} : vector<2x128xf32> to vector<2x32xf32>
    %184 = vector.extract_strided_slice %182 {offsets = [0, 32], sizes = [2, 32], strides = [1, 1]} : vector<2x128xf32> to vector<2x32xf32>
    %185 = vector.extract_strided_slice %182 {offsets = [0, 96], sizes = [2, 32], strides = [1, 1]} : vector<2x128xf32> to vector<2x32xf32>
    %186 = vector.extract_strided_slice %177 {offsets = [0, 64], sizes = [2, 32], strides = [1, 1]} : vector<2x128xf32> to vector<2x32xf32>
    %187 = math.tanh %186 : vector<2x32xf32>
    %188 = arith.mulf %184, %152 : vector<2x32xf32>
    %189 = arith.mulf %183, %187 : vector<2x32xf32>
    %190 = arith.addf %188, %189 : vector<2x32xf32>
    %191 = math.tanh %190 : vector<2x32xf32>
    %192 = arith.mulf %185, %191 : vector<2x32xf32>
    %c6 = arith.constant 6 : index
    %c0_36 = arith.constant 0 : index
    %193 = vector.load %arg11[%c6, %c0_36] : memref<16x32xf32, #tpu.memory_space<vmem>>, vector<2x32xf32>
    tpu.vector_store %arg11[%c6, %c0_36], %192 {strides = array<i32>} : memref<16x32xf32, #tpu.memory_space<vmem>>, vector<2x32xf32>,
    %194 = tpu.concatenate %176, %192 in 1 : vector<2x32xf32>, vector<2x32xf32> -> vector<2x64xf32>
    %cst_37 = arith.constant dense<0.000000e+00> : vector<2x256xf32>
    %195 = tpu.matmul %194, %0, %cst_37 {dimension_numbers = #tpu.dot_dimension_numbers<[1], [0], [0], [1], [0, 0, 1, 1], [], []>} : vector<2x64xf32>, vector<64x256xf32>, vector<2x256xf32> -> vector<2x256xf32>
    %196 = vector.broadcast %1 : vector<1x256xf32> to vector<2x256xf32>
    %197 = arith.addf %195, %196 : vector<2x256xf32>
    %198 = vector.extract_strided_slice %197 {offsets = [0, 0], sizes = [2, 128], strides = [1, 1]} : vector<2x256xf32> to vector<2x128xf32>
    %199 = arith.addf %198, %10 : vector<2x128xf32>
    %200 = arith.negf %199 : vector<2x128xf32>
    %201 = math.exp %200 : vector<2x128xf32>
    %cst_38 = arith.constant 1.000000e+00 : f32
    %202 = vector.broadcast %cst_38 : f32 to vector<2x128xf32>
    %203 = arith.addf %202, %201 : vector<2x128xf32>
    %204 = arith.divf %202, %203 : vector<2x128xf32>
    %205 = vector.extract_strided_slice %204 {offsets = [0, 0], sizes = [2, 32], strides = [1, 1]} : vector<2x128xf32> to vector<2x32xf32>
    %206 = vector.extract_strided_slice %204 {offsets = [0, 32], sizes = [2, 32], strides = [1, 1]} : vector<2x128xf32> to vector<2x32xf32>
    %207 = vector.extract_strided_slice %204 {offsets = [0, 96], sizes = [2, 32], strides = [1, 1]} : vector<2x128xf32> to vector<2x32xf32>
    %208 = vector.extract_strided_slice %199 {offsets = [0, 64], sizes = [2, 32], strides = [1, 1]} : vector<2x128xf32> to vector<2x32xf32>
    %209 = math.tanh %208 : vector<2x32xf32>
    %210 = arith.mulf %206, %174 : vector<2x32xf32>
    %211 = arith.mulf %205, %209 : vector<2x32xf32>
    %212 = arith.addf %210, %211 : vector<2x32xf32>
    %213 = math.tanh %212 : vector<2x32xf32>
    %214 = arith.mulf %207, %213 : vector<2x32xf32>
    %215 = vector.extract_strided_slice %197 {offsets = [0, 128], sizes = [2, 128], strides = [1, 1]} : vector<2x256xf32> to vector<2x128xf32>
    %216 = arith.negf %215 : vector<2x128xf32>
    %217 = math.exp %216 : vector<2x128xf32>
    %cst_39 = arith.constant 1.000000e+00 : f32
    %218 = vector.broadcast %cst_39 : f32 to vector<2x128xf32>
    %219 = arith.addf %218, %217 : vector<2x128xf32>
    %220 = arith.divf %218, %219 : vector<2x128xf32>
    %221 = vector.extract_strided_slice %220 {offsets = [0, 0], sizes = [2, 32], strides = [1, 1]} : vector<2x128xf32> to vector<2x32xf32>
    %222 = vector.extract_strided_slice %220 {offsets = [0, 32], sizes = [2, 32], strides = [1, 1]} : vector<2x128xf32> to vector<2x32xf32>
    %223 = vector.extract_strided_slice %220 {offsets = [0, 96], sizes = [2, 32], strides = [1, 1]} : vector<2x128xf32> to vector<2x32xf32>
    %224 = vector.extract_strided_slice %215 {offsets = [0, 64], sizes = [2, 32], strides = [1, 1]} : vector<2x128xf32> to vector<2x32xf32>
    %225 = math.tanh %224 : vector<2x32xf32>
    %226 = arith.mulf %222, %190 : vector<2x32xf32>
    %227 = arith.mulf %221, %225 : vector<2x32xf32>
    %228 = arith.addf %226, %227 : vector<2x32xf32>
    %229 = math.tanh %228 : vector<2x32xf32>
    %230 = arith.mulf %223, %229 : vector<2x32xf32>
    %c8 = arith.constant 8 : index
    %c0_40 = arith.constant 0 : index
    %231 = vector.load %arg11[%c8, %c0_40] : memref<16x32xf32, #tpu.memory_space<vmem>>, vector<2x32xf32>
    tpu.vector_store %arg11[%c8, %c0_40], %230 {strides = array<i32>} : memref<16x32xf32, #tpu.memory_space<vmem>>, vector<2x32xf32>,
    %232 = tpu.concatenate %214, %230 in 1 : vector<2x32xf32>, vector<2x32xf32> -> vector<2x64xf32>
    %cst_41 = arith.constant dense<0.000000e+00> : vector<2x256xf32>
    %233 = tpu.matmul %232, %0, %cst_41 {dimension_numbers = #tpu.dot_dimension_numbers<[1], [0], [0], [1], [0, 0, 1, 1], [], []>} : vector<2x64xf32>, vector<64x256xf32>, vector<2x256xf32> -> vector<2x256xf32>
    %234 = vector.broadcast %1 : vector<1x256xf32> to vector<2x256xf32>
    %235 = arith.addf %233, %234 : vector<2x256xf32>
    %236 = vector.extract_strided_slice %235 {offsets = [0, 0], sizes = [2, 128], strides = [1, 1]} : vector<2x256xf32> to vector<2x128xf32>
    %237 = arith.addf %236, %11 : vector<2x128xf32>
    %238 = arith.negf %237 : vector<2x128xf32>
    %239 = math.exp %238 : vector<2x128xf32>
    %cst_42 = arith.constant 1.000000e+00 : f32
    %240 = vector.broadcast %cst_42 : f32 to vector<2x128xf32>
    %241 = arith.addf %240, %239 : vector<2x128xf32>
    %242 = arith.divf %240, %241 : vector<2x128xf32>
    %243 = vector.extract_strided_slice %242 {offsets = [0, 0], sizes = [2, 32], strides = [1, 1]} : vector<2x128xf32> to vector<2x32xf32>
    %244 = vector.extract_strided_slice %242 {offsets = [0, 32], sizes = [2, 32], strides = [1, 1]} : vector<2x128xf32> to vector<2x32xf32>
    %245 = vector.extract_strided_slice %242 {offsets = [0, 96], sizes = [2, 32], strides = [1, 1]} : vector<2x128xf32> to vector<2x32xf32>
    %246 = vector.extract_strided_slice %237 {offsets = [0, 64], sizes = [2, 32], strides = [1, 1]} : vector<2x128xf32> to vector<2x32xf32>
    %247 = math.tanh %246 : vector<2x32xf32>
    %248 = arith.mulf %244, %212 : vector<2x32xf32>
    %249 = arith.mulf %243, %247 : vector<2x32xf32>
    %250 = arith.addf %248, %249 : vector<2x32xf32>
    %251 = math.tanh %250 : vector<2x32xf32>
    %252 = arith.mulf %245, %251 : vector<2x32xf32>
    %253 = vector.extract_strided_slice %235 {offsets = [0, 128], sizes = [2, 128], strides = [1, 1]} : vector<2x256xf32> to vector<2x128xf32>
    %254 = arith.negf %253 : vector<2x128xf32>
    %255 = math.exp %254 : vector<2x128xf32>
    %cst_43 = arith.constant 1.000000e+00 : f32
    %256 = vector.broadcast %cst_43 : f32 to vector<2x128xf32>
    %257 = arith.addf %256, %255 : vector<2x128xf32>
    %258 = arith.divf %256, %257 : vector<2x128xf32>
    %259 = vector.extract_strided_slice %258 {offsets = [0, 0], sizes = [2, 32], strides = [1, 1]} : vector<2x128xf32> to vector<2x32xf32>
    %260 = vector.extract_strided_slice %258 {offsets = [0, 32], sizes = [2, 32], strides = [1, 1]} : vector<2x128xf32> to vector<2x32xf32>
    %261 = vector.extract_strided_slice %258 {offsets = [0, 96], sizes = [2, 32], strides = [1, 1]} : vector<2x128xf32> to vector<2x32xf32>
    %262 = vector.extract_strided_slice %253 {offsets = [0, 64], sizes = [2, 32], strides = [1, 1]} : vector<2x128xf32> to vector<2x32xf32>
    %263 = math.tanh %262 : vector<2x32xf32>
    %264 = arith.mulf %260, %228 : vector<2x32xf32>
    %265 = arith.mulf %259, %263 : vector<2x32xf32>
    %266 = arith.addf %264, %265 : vector<2x32xf32>
    %267 = math.tanh %266 : vector<2x32xf32>
    %268 = arith.mulf %261, %267 : vector<2x32xf32>
    %c10 = arith.constant 10 : index
    %c0_44 = arith.constant 0 : index
    %269 = vector.load %arg11[%c10, %c0_44] : memref<16x32xf32, #tpu.memory_space<vmem>>, vector<2x32xf32>
    tpu.vector_store %arg11[%c10, %c0_44], %268 {strides = array<i32>} : memref<16x32xf32, #tpu.memory_space<vmem>>, vector<2x32xf32>,
    %270 = tpu.concatenate %252, %268 in 1 : vector<2x32xf32>, vector<2x32xf32> -> vector<2x64xf32>
    %cst_45 = arith.constant dense<0.000000e+00> : vector<2x256xf32>
    %271 = tpu.matmul %270, %0, %cst_45 {dimension_numbers = #tpu.dot_dimension_numbers<[1], [0], [0], [1], [0, 0, 1, 1], [], []>} : vector<2x64xf32>, vector<64x256xf32>, vector<2x256xf32> -> vector<2x256xf32>
    %272 = vector.broadcast %1 : vector<1x256xf32> to vector<2x256xf32>
    %273 = arith.addf %271, %272 : vector<2x256xf32>
    %274 = vector.extract_strided_slice %273 {offsets = [0, 0], sizes = [2, 128], strides = [1, 1]} : vector<2x256xf32> to vector<2x128xf32>
    %275 = arith.addf %274, %12 : vector<2x128xf32>
    %276 = arith.negf %275 : vector<2x128xf32>
    %277 = math.exp %276 : vector<2x128xf32>
    %cst_46 = arith.constant 1.000000e+00 : f32
    %278 = vector.broadcast %cst_46 : f32 to vector<2x128xf32>
    %279 = arith.addf %278, %277 : vector<2x128xf32>
    %280 = arith.divf %278, %279 : vector<2x128xf32>
    %281 = vector.extract_strided_slice %280 {offsets = [0, 0], sizes = [2, 32], strides = [1, 1]} : vector<2x128xf32> to vector<2x32xf32>
    %282 = vector.extract_strided_slice %280 {offsets = [0, 32], sizes = [2, 32], strides = [1, 1]} : vector<2x128xf32> to vector<2x32xf32>
    %283 = vector.extract_strided_slice %280 {offsets = [0, 96], sizes = [2, 32], strides = [1, 1]} : vector<2x128xf32> to vector<2x32xf32>
    %284 = vector.extract_strided_slice %275 {offsets = [0, 64], sizes = [2, 32], strides = [1, 1]} : vector<2x128xf32> to vector<2x32xf32>
    %285 = math.tanh %284 : vector<2x32xf32>
    %286 = arith.mulf %282, %250 : vector<2x32xf32>
    %287 = arith.mulf %281, %285 : vector<2x32xf32>
    %288 = arith.addf %286, %287 : vector<2x32xf32>
    %289 = math.tanh %288 : vector<2x32xf32>
    %290 = arith.mulf %283, %289 : vector<2x32xf32>
    %291 = vector.extract_strided_slice %273 {offsets = [0, 128], sizes = [2, 128], strides = [1, 1]} : vector<2x256xf32> to vector<2x128xf32>
    %292 = arith.negf %291 : vector<2x128xf32>
    %293 = math.exp %292 : vector<2x128xf32>
    %cst_47 = arith.constant 1.000000e+00 : f32
    %294 = vector.broadcast %cst_47 : f32 to vector<2x128xf32>
    %295 = arith.addf %294, %293 : vector<2x128xf32>
    %296 = arith.divf %294, %295 : vector<2x128xf32>
    %297 = vector.extract_strided_slice %296 {offsets = [0, 0], sizes = [2, 32], strides = [1, 1]} : vector<2x128xf32> to vector<2x32xf32>
    %298 = vector.extract_strided_slice %296 {offsets = [0, 32], sizes = [2, 32], strides = [1, 1]} : vector<2x128xf32> to vector<2x32xf32>
    %299 = vector.extract_strided_slice %296 {offsets = [0, 96], sizes = [2, 32], strides = [1, 1]} : vector<2x128xf32> to vector<2x32xf32>
    %300 = vector.extract_strided_slice %291 {offsets = [0, 64], sizes = [2, 32], strides = [1, 1]} : vector<2x128xf32> to vector<2x32xf32>
    %301 = math.tanh %300 : vector<2x32xf32>
    %302 = arith.mulf %298, %266 : vector<2x32xf32>
    %303 = arith.mulf %297, %301 : vector<2x32xf32>
    %304 = arith.addf %302, %303 : vector<2x32xf32>
    %305 = math.tanh %304 : vector<2x32xf32>
    %306 = arith.mulf %299, %305 : vector<2x32xf32>
    %c12 = arith.constant 12 : index
    %c0_48 = arith.constant 0 : index
    %307 = vector.load %arg11[%c12, %c0_48] : memref<16x32xf32, #tpu.memory_space<vmem>>, vector<2x32xf32>
    tpu.vector_store %arg11[%c12, %c0_48], %306 {strides = array<i32>} : memref<16x32xf32, #tpu.memory_space<vmem>>, vector<2x32xf32>,
    %308 = tpu.concatenate %290, %306 in 1 : vector<2x32xf32>, vector<2x32xf32> -> vector<2x64xf32>
    %cst_49 = arith.constant dense<0.000000e+00> : vector<2x256xf32>
    %309 = tpu.matmul %308, %0, %cst_49 {dimension_numbers = #tpu.dot_dimension_numbers<[1], [0], [0], [1], [0, 0, 1, 1], [], []>} : vector<2x64xf32>, vector<64x256xf32>, vector<2x256xf32> -> vector<2x256xf32>
    %310 = vector.broadcast %1 : vector<1x256xf32> to vector<2x256xf32>
    %311 = arith.addf %309, %310 : vector<2x256xf32>
    %312 = vector.extract_strided_slice %311 {offsets = [0, 128], sizes = [2, 128], strides = [1, 1]} : vector<2x256xf32> to vector<2x128xf32>
    %313 = arith.negf %312 : vector<2x128xf32>
    %314 = math.exp %313 : vector<2x128xf32>
    %cst_50 = arith.constant 1.000000e+00 : f32
    %315 = vector.broadcast %cst_50 : f32 to vector<2x128xf32>
    %316 = arith.addf %315, %314 : vector<2x128xf32>
    %317 = arith.divf %315, %316 : vector<2x128xf32>
    %318 = vector.extract_strided_slice %317 {offsets = [0, 0], sizes = [2, 32], strides = [1, 1]} : vector<2x128xf32> to vector<2x32xf32>
    %319 = vector.extract_strided_slice %317 {offsets = [0, 32], sizes = [2, 32], strides = [1, 1]} : vector<2x128xf32> to vector<2x32xf32>
    %320 = vector.extract_strided_slice %317 {offsets = [0, 96], sizes = [2, 32], strides = [1, 1]} : vector<2x128xf32> to vector<2x32xf32>
    %321 = vector.extract_strided_slice %312 {offsets = [0, 64], sizes = [2, 32], strides = [1, 1]} : vector<2x128xf32> to vector<2x32xf32>
    %322 = math.tanh %321 : vector<2x32xf32>
    %323 = arith.mulf %319, %304 : vector<2x32xf32>
    %324 = arith.mulf %318, %322 : vector<2x32xf32>
    %325 = arith.addf %323, %324 : vector<2x32xf32>
    %326 = math.tanh %325 : vector<2x32xf32>
    %327 = arith.mulf %320, %326 : vector<2x32xf32>
    %c14 = arith.constant 14 : index
    %c0_51 = arith.constant 0 : index
    %328 = vector.load %arg11[%c14, %c0_51] : memref<16x32xf32, #tpu.memory_space<vmem>>, vector<2x32xf32>
    tpu.vector_store %arg11[%c14, %c0_51], %327 {strides = array<i32>} : memref<16x32xf32, #tpu.memory_space<vmem>>, vector<2x32xf32>,
    %c0_52 = arith.constant 0 : index
    %c0_53 = arith.constant 0 : index
    %c0_54 = arith.constant 0 : index
    %329 = vector.load %arg9[%c0_52, %c0_53, %c0_54] : memref<2x2x32xf32, #tpu.memory_space<vmem>>, vector<1x2x32xf32>
    %330 = vector.shape_cast %329 : vector<1x2x32xf32> to vector<2x32xf32>
    %331 = vector.shape_cast %290 : vector<2x32xf32> to vector<1x2x32xf32>
    tpu.vector_store %arg9[%c0_52, %c0_53, %c0_54], %331 {strides = array<i32>} : memref<2x2x32xf32, #tpu.memory_space<vmem>>, vector<1x2x32xf32>,
    %c0_55 = arith.constant 0 : index
    %c0_56 = arith.constant 0 : index
    %c0_57 = arith.constant 0 : index
    %332 = vector.load %arg10[%c0_55, %c0_56, %c0_57] : memref<2x2x32xf32, #tpu.memory_space<vmem>>, vector<1x2x32xf32>
    %333 = vector.shape_cast %332 : vector<1x2x32xf32> to vector<2x32xf32>
    %334 = vector.shape_cast %288 : vector<2x32xf32> to vector<1x2x32xf32>
    tpu.vector_store %arg10[%c0_55, %c0_56, %c0_57], %334 {strides = array<i32>} : memref<2x2x32xf32, #tpu.memory_space<vmem>>, vector<1x2x32xf32>,
    %c1_58 = arith.constant 1 : index
    %c0_59 = arith.constant 0 : index
    %c0_60 = arith.constant 0 : index
    %335 = vector.load %arg9[%c1_58, %c0_59, %c0_60] : memref<2x2x32xf32, #tpu.memory_space<vmem>>, vector<1x2x32xf32>
    %336 = vector.shape_cast %335 : vector<1x2x32xf32> to vector<2x32xf32>
    %337 = vector.shape_cast %327 : vector<2x32xf32> to vector<1x2x32xf32>
    tpu.vector_store %arg9[%c1_58, %c0_59, %c0_60], %337 {strides = array<i32>} : memref<2x2x32xf32, #tpu.memory_space<vmem>>, vector<1x2x32xf32>,
    %c1_61 = arith.constant 1 : index
    %c0_62 = arith.constant 0 : index
    %c0_63 = arith.constant 0 : index
    %338 = vector.load %arg10[%c1_61, %c0_62, %c0_63] : memref<2x2x32xf32, #tpu.memory_space<vmem>>, vector<1x2x32xf32>
    %339 = vector.shape_cast %338 : vector<1x2x32xf32> to vector<2x32xf32>
    %340 = vector.shape_cast %325 : vector<2x32xf32> to vector<1x2x32xf32>
    tpu.vector_store %arg10[%c1_61, %c0_62, %c0_63], %340 {strides = array<i32>} : memref<2x2x32xf32, #tpu.memory_space<vmem>>, vector<1x2x32xf32>,
    %c0_64 = arith.constant 0 : index
    %c0_65 = arith.constant 0 : index
    %341 = vector.load %arg11[%c0_64, %c0_65] : memref<16x32xf32, #tpu.memory_space<vmem>>, vector<16x32xf32>
    %c0_66 = arith.constant 0 : index
    %c0_67 = arith.constant 0 : index
    %342 = vector.load %arg6[%c0_66, %c0_67] : memref<32x4xf32, #tpu.memory_space<vmem>>, vector<32x4xf32>
    %cst_68 = arith.constant dense<0.000000e+00> : vector<16x4xf32>
    %343 = tpu.matmul %341, %342, %cst_68 {dimension_numbers = #tpu.dot_dimension_numbers<[1], [0], [0], [1], [0, 0, 1, 1], [], []>} : vector<16x32xf32>, vector<32x4xf32>, vector<16x4xf32> -> vector<16x4xf32>
    %c0_69 = arith.constant 0 : index
    %c0_70 = arith.constant 0 : index
    %344 = vector.load %arg7[%c0_69, %c0_70] : memref<1x4xf32, #tpu.memory_space<vmem>>, vector<1x4xf32>
    %345 = vector.broadcast %344 : vector<1x4xf32> to vector<16x4xf32>
    %346 = arith.addf %343, %345 : vector<16x4xf32>
    %c0_71 = arith.constant 0 : index
    %c0_72 = arith.constant 0 : index
    %347 = vector.load %arg8[%c0_71, %c0_72] : memref<16x4xf32, #tpu.memory_space<vmem>>, vector<16x4xf32>
    tpu.vector_store %arg8[%c0_71, %c0_72], %346 {strides = array<i32>} : memref<16x4xf32, #tpu.memory_space<vmem>>, vector<16x4xf32>,
    return
  }
}

</mosaic_0001>

<bundles_post_ra>
// kernel: tpu_custom_call.1
= control target key start
LH: loop header
LB: loop body
LE: loop exit
PB: predicated region body
PF: predicated region fallthrough
CT: control target
= control target key end

     0   :  { %16 = vsyncpa [#allocation4], 0  ;;  %s2334_s0 = inlined_call_operand.vmem [shape: f32[16,8], index: 0, kind: input, shape index: {}]   ;;  %s2335_s1 = inlined_call_operand.vmem [shape: f32[2,2,32], index: 1, kind: input, shape index: {}]   ;;  %s2336_s2 = inlined_call_operand.vmem [shape: f32[2,2,32], index: 2, kind: input, shape index: {}]   ;;  %s2337_s3 = inlined_call_operand.vmem [shape: f32[8,128], index: 3, kind: input, shape index: {}]   ;;  %s2338_s4 = inlined_call_operand.vmem [shape: f32[1,256], index: 4, kind: input, shape index: {}]   ;;  %s2339_s5 = inlined_call_operand.hbm [shape: f32[64,256], index: 5, kind: input, shape index: {}]   ;;  %s2340_s6 = inlined_call_operand.vmem [shape: f32[32,4], index: 6, kind: input, shape index: {}]   ;;  %s2341_s7 = inlined_call_operand.vmem [shape: f32[1,4], index: 7, kind: input, shape index: {}]   ;;  %s2342_s8 = inlined_call_operand.vmem [shape: f32[16,4], index: 8, kind: output, shape index: {0}]   ;;  %s2343_s9 = inlined_call_operand.hbm [shape: f32[2,2,32], index: 9, kind: output, shape index: {1}]   ;;  %s2344_s10 = inlined_call_operand.hbm [shape: f32[2,2,32], index: 10, kind: output, shape index: {2}]  }
   0x1   :  { %17 = vsyncpa [#allocation5], 0 }
   0x2   :  { %18 = vsyncpa [#allocation8], 0  ;;  %s1921_s13 = smov [#allocation3]   ;;  %s1849_s17 = scalar_lea.hbm %s2339_s5, 2048 }
   0x3   :  { %s34_s14 = sshll.u32 %s1921_s13, 4  ;;  %p1850_p0 = scmp.ne.s32.totalorder %s2339_s5, %s1849_s17  ;;  %s35_s14 = int_to_ptr.vmem [resolvable:$true] %s34_s14 }
   0x4   :  { %p1853_p1 = scmp.lt.u32.totalorder %s1849_s17, %s2339_s5 }
   0x6   :  { %p1855_p2 = pnand %p1853_p1, %p1850_p0 }
   0x8   :  { %1858 = shalt.err (!%p1855_p2)
}
   0x9   :  { %s1859_s22 = scalar_lea.vmem %s35_s14, 2048  ;;  %p1864_p4 = scmp.lt.s32.totalorder %s35_s14, %s35_s14 }
   0xa   :  { %p1860_p3 = scmp.ne.s32.totalorder %s35_s14, %s1859_s22  ;;  %p1865_p5 = scmp.lt.s32.totalorder %s1859_s22, %s1859_s22 }
   0xc   :  { %p1866_p6 = por %p1865_p5, %p1864_p4 }
   0xe   :  { %p1867_p7 = pnand %p1866_p6, %p1860_p3 }
  0x10   :  { %1870 = shalt.err (!%p1867_p7)
}
  0x11   :  { %s1922_s23 = smov 256   ;;  %s1923_s24 = smov 16  }
  0x12   :  { %40 = dma.hbm_to_vmem [thread:$0]  %s2339_s5, 2048, %s35_s14, [#allocation4], %s1922_s23, %s1922_s23, %s1923_s24  }
  0x13   :  { %1915 = dma.done.wait [#allocation4], 2048  }
  0x14   :  { %1916 = vsyncadd [#allocation4], 4294965248  ;;  %v1924_v0 = vmov 0.0   ;;  %v1504_v1 = vld [vmem:[%s2335_s1 + $0x2] sm:$0x3]  ;;  %v49_v2 = vld [vmem:[#allocation3 + $0x8] sm:$0xff]  ;;  %v163_v35 = vlaneseq }
  0x15   :  { %241 = vmatprep.mubr.f32.mxu1 %v1924_v0  ;;  %v51_v3 = vld [vmem:[#allocation3 + $0x18] sm:$0xff]  ;;  %s1925_s29 = smov 32   ;;  %v48_v5 = vld [vmem:[#allocation3] sm:$0xff]  ;;  %v50_v6 = vld [vmem:[#allocation3 + $0x10] sm:$0xff]  ;;  %vm68_vm0 = vcmask 64512   ;;  %vm160_vm1 = vcmask 261120  }
  0x16   :  { %157 = vrot.lane.b32.xlu0 %v1504_v1, %s1925_s29  ;;  %v2003_v4 = vpack.c.bf16 %v51_v3, %v49_v2  ;;  %v53_v7 = vld [vmem:[#allocation3 + $0x28] sm:$0xff]  ;;  %v2005_v8 = vpack.c.bf16 %v50_v6, %v48_v5  ;;  %v55_v9 = vld [vmem:[#allocation3 + $0x38] sm:$0xff]  ;;  %v52_v10 = vld [vmem:[#allocation3 + $0x20] sm:$0xff]  ;;  %vm173_vm2 = vcmask 523264   ;;  %v164_v36 = vshrl.u32 %v163_v35, 7  ;;  %s1926_s18 = smov 64  }
  0x17   :  { %v54_v11 = vld [vmem:[#allocation3 + $0x30] sm:$0xff]  ;;  %v2008_v12 = vpack.c.bf16 %v55_v9, %v53_v7  ;;  %v57_v13 = vld [vmem:[#allocation3 + $0x48] sm:$0xff]  ;;  %v59_v14 = vld [vmem:[#allocation3 + $0x58] sm:$0xff]  ;;  %vm415_vm3 = vcmask 254976   ;;  %s1929_s5 = smov [#allocation7]  }
  0x18   :  { %1560 = vmatprep.subr.bf16.mxu1 %v2003_v4  ;;  %v2011_v15 = vpack.c.bf16 %v54_v11, %v52_v10  ;;  %v56_v16 = vld [vmem:[#allocation3 + $0x40] sm:$0xff]  ;;  %v2014_v17 = vpack.c.bf16 %v59_v14, %v57_v13  ;;  %v58_v18 = vld [vmem:[#allocation3 + $0x50] sm:$0xff]  ;;  %v61_v19 = vld [vmem:[#allocation3 + $0x68] sm:$0xff]  ;;  %v165_v37 = vsub.s32 0, %v164_v36  ;;  %v169_v60 = vsub.s32 1, %v164_v36  ;;  %s1484_s30 = sshll.u32 %s1929_s5, 4  ;;  %s1485_s30 = int_to_ptr.vmem [resolvable:$true] %s1484_s30 }
  0x19   :  { %1562 = vmatpush1.bf16.msra.mxu1 %v2005_v8  ;;  %v63_v20 = vld [vmem:[#allocation3 + $0x78] sm:$0xff]  ;;  %v67_v21 = vld [vmem:[%s2337_s3] sm:$0xff]  ;;  %v2030_v25 = vpack.c.bf16 %v58_v18, %v56_v16  ;;  %v60_v27 = vld [vmem:[#allocation3 + $0x60] sm:$0xff] }
  0x1a   :  { %1564 = vmatprep.subr.bf16.mxu1 %v2008_v12  ;;  %v65_v22 = vld [vmem:[%s2334_s0] sm:$0xff]  ;;  %v66_v23 = vld [vmem:[%s2334_s0 + $0x8] sm:$0xff]  ;;  %1543 = vmatprep.subr.mxu0 %v67_v21  ;;  %v2033_v26 = vpack.c.bf16 %v63_v20, %v61_v19 }
  0x1b   :  { %1545 = vmatprep.mubr.msk.f32.mxu0 %vm68_vm0, %v65_v22  ;;  %v153_v24 = vld [vmem:[%s2336_s2] sm:$0x3]  ;;  %1544 = vmatpush3.msra.mxu0 %v67_v21  ;;  %v1505_v9 = vld [vmem:[%s2336_s2 + $0x2] sm:$0x3]  ;;  %s1927_s2 = smov 96  }
  0x1c   :  { %v62_v28 = vld [vmem:[#allocation3 + $0x70] sm:$0xff]  ;;  %1546 = vmatmul.mubr.msk.f32.vlgmr.msra.gmra.mrb[0].mxu0 %vm68_vm0, %v66_v23  ;;  %256 = vrot.lane.b32.xlu1 %v153_v24, %s1925_s29 }
  0x1d   :  { %1566 = vmatpush1.bf16.msra.mxu1 %v2011_v15  ;;  %1576 = vmatprep.subr.bf16.mxu0 %v2003_v4  ;;  %v2041_v29 = vpack.c.bf16 %v62_v28, %v60_v27  ;;  %v150_v30 = vld [vmem:[%s2335_s1] sm:$0x3] }
  0x1e   :  { %1568 = vmatprep.subr.bf16.mxu1 %v2014_v17  ;;  %1578 = vmatpush1.bf16.msra.mxu0 %v2005_v8  ;;  %v64_v38 = vld [vmem:[%s2338_s4] sm:$0x3] }
  0x1f   :  { %348 = vmatprep.mubr.f32.mxu0 %v1924_v0  ;;  %1580 = vmatprep.subr.bf16.mxu0 %v2008_v12  ;;  %v2074_v39 = vrot.slane %v64_v38, %v165_v37  ;;  %v2093_v61 = vrot.slane %v64_v38, %v169_v60 }
  0x21   :  { %1570 = vmatpush1.bf16.msra.mxu1 %v2030_v25 }
  0x22   :  { %1572 = vmatprep.subr.bf16.mxu1 %v2033_v26  ;;  %1582 = vmatpush1.bf16.msra.mxu0 %v2011_v15 }
  0x23   :  { %1584 = vmatprep.subr.bf16.mxu0 %v2014_v17 }
  0x25   :  { %1574 = vmatpush1.bf16.msra.mxu1 %v2041_v29 }
  0x26   :  { %1592 = vmatprep.subr.bf16.mxu1 %v2003_v4  ;;  %1586 = vmatpush1.bf16.msra.mxu0 %v2030_v25 }
  0x27   :  { %1588 = vmatprep.subr.bf16.mxu0 %v2033_v26 }
  0x2a   :  { %1590 = vmatpush1.bf16.msra.mxu0 %v2041_v29 }
  0x2b   :  { %1608 = vmatprep.subr.bf16.mxu0 %v2003_v4 }
  0x88   :  { %v158_v31 = vpop.permute.xlu0 %157 }
  0x89   :  { %v161_v32 = vsel %vm160_vm1, %v150_v30, %v158_v31 }
  0x8a   :  { %1506 = vmatmul.mubr.msk.f32.vlgmr.msra.gmra.mrb[0].mxu1 %vm173_vm2, %v161_v32 }
  0x8b   :  { %1594 = vmatpush1.bf16.msra.mxu1 %v2005_v8  ;;  %492 = vmatprep.mubr.f32.mxu1 %v1924_v0 }
  0x8c   :  { %1596 = vmatprep.subr.bf16.mxu1 %v2008_v12 }
  0x8e   :  { %v257_v51 = vpop.permute.xlu1 %256 }
  0x8f   :  { %1598 = vmatpush1.bf16.msra.mxu1 %v2011_v15 }
  0x90   :  { %1600 = vmatprep.subr.bf16.mxu1 %v2014_v17 }
  0x93   :  { %1602 = vmatpush1.bf16.msra.mxu1 %v2030_v25 }
  0x94   :  { %1604 = vmatprep.subr.bf16.mxu1 %v2033_v26 }
  0x97   :  { %1606 = vmatpush1.bf16.msra.mxu1 %v2041_v29 }
  0x98   :  { %1624 = vmatprep.subr.bf16.mxu1 %v2003_v4 }
  0xef   :  { %v2067_v33 = vpop.f32.mrb[0].mxu0 }
  0xf0   :  { %v2069_v34 = vpop.f32.mrb[1].mxu0 }
  0xf1   :  { %v356_v1 = vrot.slane %v2069_v34, 2 }
 0x15d   :  { %v243_v40 = vpop.f32.mrb[0].mxu1 }
 0x15e   :  { %v244_v41 = vadd.f32 %v243_v40, %v2074_v39  ;;  %v245_v42 = vpop.f32.mrb[1].mxu1 }
 0x160   :  { %v247_v43 = vadd.f32 %v244_v41, %v2069_v34 }
 0x162   :  { %1721 = vtanh.f32 %v247_v43  ;;  %v1507_v45 = vmul.f32 -1.442695, %v247_v43 }
 0x164   :  { %1723 = vpow2.f32 %v1507_v45 }
 0x16c   :  { %v1722_v44 = vpop.eup %1721 }
 0x16d   :  { %261 = vrot.lane.b32.xlu0 %v1722_v44, %s1926_s18 }
 0x16e   :  { %v1724_v46 = vpop.eup %1723 }
 0x16f   :  { %v251_v47 = vadd.f32 1.0, %v1724_v46 }
 0x171   :  { %1725 = vrcp.f32 %v251_v47 }
 0x17b   :  { %v1726_v48 = vpop.eup %1725 }
 0x17c   :  { %v259_v52 = vmul.f32 %v1726_v48, %v257_v51 }
 0x1df   :  { %v262_v49 = vpop.permute.xlu0 %261 }
 0x1e0   :  { %v264_v50 = vmul.f32 %v1726_v48, %v262_v49  ;;  %v499_v49 = vrot.slane %v2069_v34, 4 }
 0x1e2   :  { %266 = vrot.lane.b32.xlu1 %v264_v50, %s1925_s29 }
 0x254   :  { %v267_v53 = vpop.permute.xlu1 %266 }
 0x255   :  { %v269_v54 = vadd.f32 %v267_v53, %v259_v52 }
 0x257   :  { %1727 = vtanh.f32 %v269_v54 }
 0x261   :  { %v1728_v55 = vpop.eup %1727 }
 0x262   :  { %272 = vrot.lane.b32.xlu0 %v1728_v55, %s1926_s18 }
 0x2d4   :  { %v273_v56 = vpop.permute.xlu0 %272 }
 0x2d5   :  { %v275_v57 = vmul.f32 %v1726_v48, %v273_v56 }
 0x2d7   :  { %277 = vrot.lane.b32.xlu1 %v275_v57, %s1925_s29 }
 0x349   :  { %v278_v58 = vpop.permute.xlu1 %277 }
 0x34a   :  { %v280_v59 = vsel %vm160_vm1, %v278_v58, %v158_v31 }
 0x34b   :  { %1508 = vmatmul.mubr.msk.f32.vlgmr.msra.gmra.mrb[2].mxu0 %vm173_vm2, %v280_v59 }
 0x34c   :  { %1610 = vmatpush1.bf16.msra.mxu0 %v2005_v8  ;;  %630 = vmatprep.mubr.f32.mxu0 %v1924_v0 }
 0x34d   :  { %1612 = vmatprep.subr.bf16.mxu0 %v2008_v12 }
 0x350   :  { %1614 = vmatpush1.bf16.msra.mxu0 %v2011_v15 }
 0x351   :  { %1616 = vmatprep.subr.bf16.mxu0 %v2014_v17 }
 0x354   :  { %1618 = vmatpush1.bf16.msra.mxu0 %v2030_v25 }
 0x355   :  { %1620 = vmatprep.subr.bf16.mxu0 %v2033_v26 }
 0x358   :  { %1622 = vmatpush1.bf16.msra.mxu0 %v2041_v29 }
 0x359   :  { %1640 = vmatprep.subr.bf16.mxu0 %v2003_v4 }
 0x41e   :  { %v350_v62 = vpop.f32.mrb[2].mxu0 }
 0x41f   :  { %v351_v63 = vadd.f32 %v350_v62, %v2074_v39  ;;  %v352_v2 = vpop.f32.mrb[3].mxu0 }
 0x420   :  { %v353_v3 = vadd.f32 %v352_v2, %v2093_v61 }
 0x421   :  { %v358_v5 = vadd.f32 %v356_v1, %v351_v63 }
 0x422   :  { %1729 = vtanh.f32 %v353_v3  ;;  %v1510_v10 = vmul.f32 -1.442695, %v353_v3 }
 0x423   :  { %1731 = vtanh.f32 %v358_v5  ;;  %v1509_v11 = vmul.f32 -1.442695, %v358_v5 }
 0x424   :  { %1733 = vpow2.f32 %v1510_v10 }
 0x425   :  { %1735 = vpow2.f32 %v1509_v11 }
 0x42c   :  { %v1730_v6 = vpop.eup %1729 }
 0x42d   :  { %v1732_v7 = vpop.eup %1731  ;;  %396 = vrot.lane.b32.xlu1 %v1730_v6, %s1926_s18 }
 0x42e   :  { %368 = vrot.lane.b32.xlu0 %v1732_v7, %s1926_s18  ;;  %v1734_v13 = vpop.eup %1733 }
 0x42f   :  { %v1736_v14 = vpop.eup %1735  ;;  %v386_v16 = vadd.f32 1.0, %v1734_v13 }
 0x430   :  { %v362_v18 = vadd.f32 1.0, %v1736_v14 }
 0x431   :  { %1737 = vrcp.f32 %v386_v16 }
 0x432   :  { %391 = vrot.lane.b32.xlu0 %v1505_v9, %s1925_s29  ;;  %1739 = vrcp.f32 %v362_v18 }
 0x43b   :  { %v1738_v19 = vpop.eup %1737 }
 0x43c   :  { %v1740_v21 = vpop.eup %1739 }
 0x43d   :  { %v366_v31 = vmul.f32 %v1740_v21, %v269_v54 }
 0x49f   :  { %v397_v20 = vpop.permute.xlu1 %396 }
 0x4a0   :  { %v399_v22 = vmul.f32 %v1738_v19, %v397_v20  ;;  %v369_v23 = vpop.permute.xlu0 %368 }
 0x4a1   :  { %v371_v24 = vmul.f32 %v1740_v21, %v369_v23 }
 0x4a2   :  { %401 = vrot.lane.b32.xlu0 %v399_v22, %s1925_s29 }
 0x4a3   :  { %373 = vrot.lane.b32.xlu1 %v371_v24, %s1925_s29 }
 0x4a4   :  { %v392_v27 = vpop.permute.xlu0 %391 }
 0x4a5   :  { %v394_v28 = vmul.f32 %v1738_v19, %v392_v27 }
 0x514   :  { %v402_v30 = vpop.permute.xlu0 %401 }
 0x515   :  { %v404_v32 = vadd.f32 %v402_v30, %v394_v28  ;;  %v374_v35 = vpop.permute.xlu1 %373  ;;  %v637_v30 = vrot.slane %v2069_v34, 6 }
 0x516   :  { %v376_v36 = vadd.f32 %v374_v35, %v366_v31 }
 0x517   :  { %1741 = vtanh.f32 %v404_v32 }
 0x518   :  { %1743 = vtanh.f32 %v376_v36 }
 0x521   :  { %v1742_v37 = vpop.eup %1741 }
 0x522   :  { %v1744_v38 = vpop.eup %1743  ;;  %407 = vrot.lane.b32.xlu0 %v1742_v37, %s1926_s18 }
 0x523   :  { %379 = vrot.lane.b32.xlu1 %v1744_v38, %s1926_s18 }
 0x594   :  { %v408_v40 = vpop.permute.xlu0 %407 }
 0x595   :  { %v2108_v41 = vmul.f32 %v1738_v19, %v408_v40  ;;  %v380_v42 = vpop.permute.xlu1 %379 }
 0x596   :  { %v382_v43 = vmul.f32 %v1740_v21, %v380_v42 }
 0x597   :  { %421 = vrot.lane.b32.xlu0 %v2108_v41, %s1926_s18 }
 0x598   :  { %418 = vrot.lane.b32.xlu1 %v382_v43, %s1925_s29 }
 0x609   :  { %v422_v44 = vpop.permute.xlu0 %421 }
 0x60a   :  { %v419_v45 = vpop.permute.xlu1 %418 }
 0x60b   :  { %v424_v46 = vsel %vm160_vm1, %v419_v45, %v422_v44 }
 0x60c   :  { %1511 = vmatmul.mubr.msk.f32.vlgmr.msra.gmra.mrb[2].mxu1 %vm173_vm2, %v424_v46 }
 0x60d   :  { %1626 = vmatpush1.bf16.msra.mxu1 %v2005_v8  ;;  %768 = vmatprep.mubr.f32.mxu1 %v1924_v0 }
 0x60e   :  { %1628 = vmatprep.subr.bf16.mxu1 %v2008_v12 }
 0x611   :  { %1630 = vmatpush1.bf16.msra.mxu1 %v2011_v15 }
 0x612   :  { %1632 = vmatprep.subr.bf16.mxu1 %v2014_v17 }
 0x615   :  { %1634 = vmatpush1.bf16.msra.mxu1 %v2030_v25 }
 0x616   :  { %1636 = vmatprep.subr.bf16.mxu1 %v2033_v26 }
 0x619   :  { %1638 = vmatpush1.bf16.msra.mxu1 %v2041_v29 }
 0x61a   :  { %1656 = vmatprep.subr.bf16.mxu1 %v2003_v4 }
 0x6df   :  { %v494_v47 = vpop.f32.mrb[2].mxu1 }
 0x6e0   :  { %v495_v48 = vadd.f32 %v494_v47, %v2074_v39  ;;  %v496_v50 = vpop.f32.mrb[3].mxu1 }
 0x6e1   :  { %v497_v51 = vadd.f32 %v496_v50, %v2093_v61 }
 0x6e2   :  { %v501_v52 = vadd.f32 %v499_v49, %v495_v48 }
 0x6e3   :  { %1745 = vtanh.f32 %v497_v51  ;;  %v1513_v55 = vmul.f32 -1.442695, %v497_v51 }
 0x6e4   :  { %1747 = vtanh.f32 %v501_v52  ;;  %v1512_v56 = vmul.f32 -1.442695, %v501_v52 }
 0x6e5   :  { %1749 = vpow2.f32 %v1513_v55 }
 0x6e6   :  { %1751 = vpow2.f32 %v1512_v56 }
 0x6ed   :  { %v1746_v53 = vpop.eup %1745 }
 0x6ee   :  { %v1748_v54 = vpop.eup %1747  ;;  %535 = vrot.lane.b32.xlu0 %v1746_v53, %s1926_s18 }
 0x6ef   :  { %511 = vrot.lane.b32.xlu1 %v1748_v54, %s1926_s18  ;;  %v1750_v57 = vpop.eup %1749 }
 0x6f0   :  { %v1752_v58 = vpop.eup %1751  ;;  %v529_v59 = vadd.f32 1.0, %v1750_v57 }
 0x6f1   :  { %v505_v60 = vadd.f32 1.0, %v1752_v58 }
 0x6f2   :  { %1753 = vrcp.f32 %v529_v59 }
 0x6f3   :  { %1755 = vrcp.f32 %v505_v60 }
 0x6fc   :  { %v1754_v62 = vpop.eup %1753 }
 0x6fd   :  { %v1756_v1 = vpop.eup %1755  ;;  %v533_v6 = vmul.f32 %v1754_v62, %v404_v32 }
 0x6fe   :  { %v509_v9 = vmul.f32 %v1756_v1, %v376_v36 }
 0x760   :  { %v536_v63 = vpop.permute.xlu0 %535 }
 0x761   :  { %v538_v2 = vmul.f32 %v1754_v62, %v536_v63  ;;  %v512_v3 = vpop.permute.xlu1 %511 }
 0x762   :  { %v514_v5 = vmul.f32 %v1756_v1, %v512_v3 }
 0x763   :  { %540 = vrot.lane.b32.xlu0 %v538_v2, %s1925_s29 }
 0x764   :  { %516 = vrot.lane.b32.xlu1 %v514_v5, %s1925_s29 }
 0x7d5   :  { %v541_v7 = vpop.permute.xlu0 %540 }
 0x7d6   :  { %v543_v10 = vadd.f32 %v541_v7, %v533_v6  ;;  %v517_v11 = vpop.permute.xlu1 %516 }
 0x7d7   :  { %v519_v13 = vadd.f32 %v517_v11, %v509_v9 }
 0x7d8   :  { %1757 = vtanh.f32 %v543_v10 }
 0x7d9   :  { %1759 = vtanh.f32 %v519_v13 }
 0x7e2   :  { %v1758_v14 = vpop.eup %1757 }
 0x7e3   :  { %v1760_v16 = vpop.eup %1759  ;;  %546 = vrot.lane.b32.xlu0 %v1758_v14, %s1926_s18 }
 0x7e4   :  { %522 = vrot.lane.b32.xlu1 %v1760_v16, %s1926_s18 }
 0x855   :  { %v547_v18 = vpop.permute.xlu0 %546 }
 0x856   :  { %v2133_v19 = vmul.f32 %v1754_v62, %v547_v18  ;;  %v523_v20 = vpop.permute.xlu1 %522 }
 0x857   :  { %v525_v21 = vmul.f32 %v1756_v1, %v523_v20 }
 0x858   :  { %559 = vrot.lane.b32.xlu0 %v2133_v19, %s1926_s18 }
 0x859   :  { %556 = vrot.lane.b32.xlu1 %v525_v21, %s1925_s29 }
 0x8ca   :  { %v560_v22 = vpop.permute.xlu0 %559 }
 0x8cb   :  { %v557_v23 = vpop.permute.xlu1 %556 }
 0x8cc   :  { %v562_v24 = vsel %vm160_vm1, %v557_v23, %v560_v22 }
 0x8cd   :  { %1514 = vmatmul.mubr.msk.f32.vlgmr.msra.gmra.mrb[4].mxu0 %vm173_vm2, %v562_v24 }
 0x8ce   :  { %1642 = vmatpush1.bf16.msra.mxu0 %v2005_v8  ;;  %904 = vmatprep.mubr.f32.mxu0 %v1924_v0 }
 0x8cf   :  { %1644 = vmatprep.subr.bf16.mxu0 %v2008_v12 }
 0x8d2   :  { %1646 = vmatpush1.bf16.msra.mxu0 %v2011_v15 }
 0x8d3   :  { %1648 = vmatprep.subr.bf16.mxu0 %v2014_v17 }
 0x8d6   :  { %1650 = vmatpush1.bf16.msra.mxu0 %v2030_v25 }
 0x8d7   :  { %1652 = vmatprep.subr.bf16.mxu0 %v2033_v26 }
 0x8da   :  { %1654 = vmatpush1.bf16.msra.mxu0 %v2041_v29 }
 0x8db   :  { %1672 = vmatprep.subr.bf16.mxu0 %v2003_v4 }
 0x9a0   :  { %v632_v27 = vpop.f32.mrb[4].mxu0 }
 0x9a1   :  { %v633_v28 = vadd.f32 %v632_v27, %v2074_v39  ;;  %v634_v31 = vpop.f32.mrb[5].mxu0 }
 0x9a2   :  { %v635_v32 = vadd.f32 %v634_v31, %v2093_v61 }
 0x9a3   :  { %v639_v35 = vadd.f32 %v637_v30, %v633_v28 }
 0x9a4   :  { %1761 = vtanh.f32 %v635_v32  ;;  %v1516_v38 = vmul.f32 -1.442695, %v635_v32 }
 0x9a5   :  { %1763 = vtanh.f32 %v639_v35  ;;  %v1515_v40 = vmul.f32 -1.442695, %v639_v35 }
 0x9a6   :  { %1765 = vpow2.f32 %v1516_v38 }
 0x9a7   :  { %1767 = vpow2.f32 %v1515_v40 }
 0x9ae   :  { %v1762_v36 = vpop.eup %1761 }
 0x9af   :  { %v1764_v37 = vpop.eup %1763  ;;  %673 = vrot.lane.b32.xlu0 %v1762_v36, %s1926_s18 }
 0x9b0   :  { %649 = vrot.lane.b32.xlu1 %v1764_v37, %s1926_s18  ;;  %v1766_v42 = vpop.eup %1765 }
 0x9b1   :  { %v1768_v43 = vpop.eup %1767  ;;  %v667_v44 = vadd.f32 1.0, %v1766_v42 }
 0x9b2   :  { %v643_v34 = vadd.f32 1.0, %v1768_v43 }
 0x9b3   :  { %1769 = vrcp.f32 %v667_v44 }
 0x9b4   :  { %1771 = vrcp.f32 %v643_v34 }
 0x9bd   :  { %v1770_v45 = vpop.eup %1769 }
 0x9be   :  { %v1772_v47 = vpop.eup %1771  ;;  %v671_v51 = vmul.f32 %v1770_v45, %v543_v10 }
 0x9bf   :  { %v647_v53 = vmul.f32 %v1772_v47, %v519_v13 }
 0xa21   :  { %v674_v46 = vpop.permute.xlu0 %673 }
 0xa22   :  { %v676_v48 = vmul.f32 %v1770_v45, %v674_v46  ;;  %v650_v49 = vpop.permute.xlu1 %649 }
 0xa23   :  { %v652_v50 = vmul.f32 %v1772_v47, %v650_v49 }
 0xa24   :  { %678 = vrot.lane.b32.xlu0 %v676_v48, %s1925_s29 }
 0xa25   :  { %654 = vrot.lane.b32.xlu1 %v652_v50, %s1925_s29 }
 0xa96   :  { %v679_v52 = vpop.permute.xlu0 %678 }
 0xa97   :  { %v681_v54 = vadd.f32 %v679_v52, %v671_v51  ;;  %v655_v55 = vpop.permute.xlu1 %654  ;;  %v912_v51 = vrot.slane %v2067_v33, 2 }
 0xa98   :  { %v657_v56 = vadd.f32 %v655_v55, %v647_v53 }
 0xa99   :  { %1773 = vtanh.f32 %v681_v54 }
 0xa9a   :  { %1775 = vtanh.f32 %v657_v56 }
 0xaa3   :  { %v1774_v57 = vpop.eup %1773 }
 0xaa4   :  { %v1776_v58 = vpop.eup %1775  ;;  %684 = vrot.lane.b32.xlu0 %v1774_v57, %s1926_s18 }
 0xaa5   :  { %660 = vrot.lane.b32.xlu1 %v1776_v58, %s1926_s18 }
 0xb16   :  { %v685_v59 = vpop.permute.xlu0 %684 }
 0xb17   :  { %v2158_v60 = vmul.f32 %v1770_v45, %v685_v59  ;;  %v661_v62 = vpop.permute.xlu1 %660 }
 0xb18   :  { %v663_v63 = vmul.f32 %v1772_v47, %v661_v62 }
 0xb19   :  { %697 = vrot.lane.b32.xlu0 %v2158_v60, %s1926_s18 }
 0xb1a   :  { %694 = vrot.lane.b32.xlu1 %v663_v63, %s1925_s29 }
 0xb8b   :  { %v698_v1 = vpop.permute.xlu0 %697 }
 0xb8c   :  { %v695_v2 = vpop.permute.xlu1 %694 }
 0xb8d   :  { %v700_v3 = vsel %vm160_vm1, %v695_v2, %v698_v1 }
 0xb8e   :  { %1517 = vmatmul.mubr.msk.f32.vlgmr.msra.gmra.mrb[4].mxu1 %vm173_vm2, %v700_v3 }
 0xb8f   :  { %1658 = vmatpush1.bf16.msra.mxu1 %v2005_v8  ;;  %1043 = vmatprep.mubr.f32.mxu1 %v1924_v0 }
 0xb90   :  { %1660 = vmatprep.subr.bf16.mxu1 %v2008_v12 }
 0xb93   :  { %1662 = vmatpush1.bf16.msra.mxu1 %v2011_v15 }
 0xb94   :  { %1664 = vmatprep.subr.bf16.mxu1 %v2014_v17 }
 0xb97   :  { %1666 = vmatpush1.bf16.msra.mxu1 %v2030_v25 }
 0xb98   :  { %1668 = vmatprep.subr.bf16.mxu1 %v2033_v26 }
 0xb9b   :  { %1670 = vmatpush1.bf16.msra.mxu1 %v2041_v29 }
 0xb9c   :  { %1688 = vmatprep.subr.bf16.mxu1 %v2003_v4 }
 0xc61   :  { %v770_v5 = vpop.f32.mrb[4].mxu1 }
 0xc62   :  { %v771_v6 = vadd.f32 %v770_v5, %v2074_v39  ;;  %v772_v7 = vpop.f32.mrb[5].mxu1 }
 0xc63   :  { %v773_v9 = vadd.f32 %v772_v7, %v2093_v61 }
 0xc64   :  { %v775_v10 = vadd.f32 %v2067_v33, %v771_v6 }
 0xc65   :  { %1777 = vtanh.f32 %v773_v9  ;;  %v1519_v14 = vmul.f32 -1.442695, %v773_v9 }
 0xc66   :  { %1779 = vtanh.f32 %v775_v10  ;;  %v1518_v16 = vmul.f32 -1.442695, %v775_v10 }
 0xc67   :  { %1781 = vpow2.f32 %v1519_v14 }
 0xc68   :  { %1783 = vpow2.f32 %v1518_v16 }
 0xc6f   :  { %v1778_v11 = vpop.eup %1777 }
 0xc70   :  { %v1780_v13 = vpop.eup %1779  ;;  %809 = vrot.lane.b32.xlu0 %v1778_v11, %s1926_s18 }
 0xc71   :  { %785 = vrot.lane.b32.xlu1 %v1780_v13, %s1926_s18  ;;  %v1782_v4 = vpop.eup %1781 }
 0xc72   :  { %v1784_v18 = vpop.eup %1783  ;;  %v803_v20 = vadd.f32 1.0, %v1782_v4 }
 0xc73   :  { %v779_v21 = vadd.f32 1.0, %v1784_v18 }
 0xc74   :  { %1785 = vrcp.f32 %v803_v20 }
 0xc75   :  { %1787 = vrcp.f32 %v779_v21 }
 0xc7e   :  { %v1786_v22 = vpop.eup %1785 }
 0xc7f   :  { %v1788_v24 = vpop.eup %1787  ;;  %v807_v31 = vmul.f32 %v1786_v22, %v681_v54 }
 0xc80   :  { %v783_v35 = vmul.f32 %v1788_v24, %v657_v56 }
 0xce2   :  { %v810_v23 = vpop.permute.xlu0 %809 }
 0xce3   :  { %v812_v27 = vmul.f32 %v1786_v22, %v810_v23  ;;  %v786_v28 = vpop.permute.xlu1 %785 }
 0xce4   :  { %v788_v30 = vmul.f32 %v1788_v24, %v786_v28 }
 0xce5   :  { %814 = vrot.lane.b32.xlu0 %v812_v27, %s1925_s29 }
 0xce6   :  { %790 = vrot.lane.b32.xlu1 %v788_v30, %s1925_s29 }
 0xd57   :  { %v815_v32 = vpop.permute.xlu0 %814 }
 0xd58   :  { %v817_v36 = vadd.f32 %v815_v32, %v807_v31  ;;  %v791_v37 = vpop.permute.xlu1 %790 }
 0xd59   :  { %v793_v38 = vadd.f32 %v791_v37, %v783_v35  ;;  %v1050_v35 = vrot.slane %v2067_v33, 4 }
 0xd5a   :  { %1789 = vtanh.f32 %v817_v36 }
 0xd5b   :  { %1791 = vtanh.f32 %v793_v38 }
 0xd64   :  { %v1790_v40 = vpop.eup %1789 }
 0xd65   :  { %v1792_v42 = vpop.eup %1791  ;;  %820 = vrot.lane.b32.xlu0 %v1790_v40, %s1926_s18 }
 0xd66   :  { %796 = vrot.lane.b32.xlu1 %v1792_v42, %s1926_s18 }
 0xdd7   :  { %v821_v43 = vpop.permute.xlu0 %820 }
 0xdd8   :  { %v2183_v44 = vmul.f32 %v1786_v22, %v821_v43  ;;  %v797_v34 = vpop.permute.xlu1 %796 }
 0xdd9   :  { %v799_v45 = vmul.f32 %v1788_v24, %v797_v34 }
 0xdda   :  { %833 = vrot.lane.b32.xlu0 %v2183_v44, %s1926_s18 }
 0xddb   :  { %830 = vrot.lane.b32.xlu1 %v799_v45, %s1925_s29 }
 0xe4c   :  { %v834_v46 = vpop.permute.xlu0 %833 }
 0xe4d   :  { %v831_v47 = vpop.permute.xlu1 %830 }
 0xe4e   :  { %v836_v48 = vsel %vm160_vm1, %v831_v47, %v834_v46 }
 0xe4f   :  { %1520 = vmatmul.mubr.msk.f32.vlgmr.msra.gmra.mrb[6].mxu0 %vm173_vm2, %v836_v48 }
 0xe50   :  { %1674 = vmatpush1.bf16.msra.mxu0 %v2005_v8  ;;  %1181 = vmatprep.mubr.f32.mxu0 %v1924_v0 }
 0xe51   :  { %1676 = vmatprep.subr.bf16.mxu0 %v2008_v12 }
 0xe54   :  { %1678 = vmatpush1.bf16.msra.mxu0 %v2011_v15 }
 0xe55   :  { %1680 = vmatprep.subr.bf16.mxu0 %v2014_v17 }
 0xe58   :  { %1682 = vmatpush1.bf16.msra.mxu0 %v2030_v25 }
 0xe59   :  { %1684 = vmatprep.subr.bf16.mxu0 %v2033_v26 }
 0xe5c   :  { %1686 = vmatpush1.bf16.msra.mxu0 %v2041_v29 }
 0xf22   :  { %v906_v49 = vpop.f32.mrb[6].mxu0 }
 0xf23   :  { %v907_v50 = vadd.f32 %v906_v49, %v2074_v39  ;;  %v908_v52 = vpop.f32.mrb[7].mxu0 }
 0xf24   :  { %v909_v53 = vadd.f32 %v908_v52, %v2093_v61 }
 0xf25   :  { %v914_v54 = vadd.f32 %v912_v51, %v907_v50 }
 0xf26   :  { %1793 = vtanh.f32 %v909_v53  ;;  %v1522_v57 = vmul.f32 -1.442695, %v909_v53 }
 0xf27   :  { %1795 = vtanh.f32 %v914_v54  ;;  %v1521_v58 = vmul.f32 -1.442695, %v914_v54 }
 0xf28   :  { %1797 = vpow2.f32 %v1522_v57 }
 0xf29   :  { %1799 = vpow2.f32 %v1521_v58 }
 0xf30   :  { %v1794_v55 = vpop.eup %1793 }
 0xf31   :  { %v1796_v56 = vpop.eup %1795  ;;  %948 = vrot.lane.b32.xlu0 %v1794_v55, %s1926_s18 }
 0xf32   :  { %924 = vrot.lane.b32.xlu1 %v1796_v56, %s1926_s18  ;;  %v1798_v59 = vpop.eup %1797 }
 0xf33   :  { %v1800_v62 = vpop.eup %1799  ;;  %v942_v63 = vadd.f32 1.0, %v1798_v59 }
 0xf34   :  { %v918_v1 = vadd.f32 1.0, %v1800_v62 }
 0xf35   :  { %1801 = vrcp.f32 %v942_v63 }
 0xf36   :  { %1803 = vrcp.f32 %v918_v1 }
 0xf3f   :  { %v1802_v2 = vpop.eup %1801 }
 0xf40   :  { %v1804_v5 = vpop.eup %1803  ;;  %v946_v10 = vmul.f32 %v1802_v2, %v817_v36 }
 0xf41   :  { %v922_v13 = vmul.f32 %v1804_v5, %v793_v38 }
 0xfa3   :  { %v949_v3 = vpop.permute.xlu0 %948 }
 0xfa4   :  { %v951_v6 = vmul.f32 %v1802_v2, %v949_v3  ;;  %v925_v7 = vpop.permute.xlu1 %924  ;;  %v1188_v3 = vrot.slane %v2067_v33, 6 }
 0xfa5   :  { %v927_v9 = vmul.f32 %v1804_v5, %v925_v7 }
 0xfa6   :  { %953 = vrot.lane.b32.xlu0 %v951_v6, %s1925_s29 }
 0xfa7   :  { %929 = vrot.lane.b32.xlu1 %v927_v9, %s1925_s29 }
0x1018   :  { %v954_v11 = vpop.permute.xlu0 %953 }
0x1019   :  { %v956_v14 = vadd.f32 %v954_v11, %v946_v10  ;;  %v930_v16 = vpop.permute.xlu1 %929 }
0x101a   :  { %v932_v4 = vadd.f32 %v930_v16, %v922_v13 }
0x101b   :  { %1805 = vtanh.f32 %v956_v14 }
0x101c   :  { %1807 = vtanh.f32 %v932_v4 }
0x1025   :  { %v1806_v18 = vpop.eup %1805 }
0x1026   :  { %v1808_v20 = vpop.eup %1807  ;;  %959 = vrot.lane.b32.xlu0 %v1806_v18, %s1926_s18 }
0x1027   :  { %935 = vrot.lane.b32.xlu1 %v1808_v20, %s1926_s18 }
0x1098   :  { %v960_v21 = vpop.permute.xlu0 %959 }
0x1099   :  { %v2207_v22 = vmul.f32 %v1802_v2, %v960_v21  ;;  %v936_v23 = vpop.permute.xlu1 %935 }
0x109a   :  { %v938_v24 = vmul.f32 %v1804_v5, %v936_v23 }
0x109b   :  { %972 = vrot.lane.b32.xlu0 %v2207_v22, %s1926_s18 }
0x109c   :  { %969 = vrot.lane.b32.xlu1 %v938_v24, %s1925_s29 }
0x110d   :  { %v973_v27 = vpop.permute.xlu0 %972 }
0x110e   :  { %v970_v28 = vpop.permute.xlu1 %969 }
0x110f   :  { %v975_v30 = vsel %vm160_vm1, %v970_v28, %v973_v27 }
0x1110   :  { %1523 = vmatmul.mubr.msk.f32.vlgmr.msra.gmra.mrb[6].mxu1 %vm173_vm2, %v975_v30 }
0x1111   :  { %1690 = vmatpush1.bf16.msra.mxu1 %v2005_v8  ;;  %1319 = vmatprep.mubr.f32.mxu1 %v1924_v0 }
0x1112   :  { %1692 = vmatprep.subr.bf16.mxu1 %v2008_v12 }
0x1115   :  { %1694 = vmatpush1.bf16.msra.mxu1 %v2011_v15 }
0x1116   :  { %1696 = vmatprep.subr.bf16.mxu1 %v2014_v17 }
0x1119   :  { %1698 = vmatpush1.bf16.msra.mxu1 %v2030_v25 }
0x111a   :  { %1700 = vmatprep.subr.bf16.mxu1 %v2033_v26 }
0x111d   :  { %1702 = vmatpush1.bf16.msra.mxu1 %v2041_v29 }
0x11e3   :  { %v1045_v31 = vpop.f32.mrb[6].mxu1 }
0x11e4   :  { %v1046_v32 = vadd.f32 %v1045_v31, %v2074_v39  ;;  %v1047_v8 = vpop.f32.mrb[7].mxu1 }
0x11e5   :  { %v1048_v0 = vadd.f32 %v1047_v8, %v2093_v61 }
0x11e6   :  { %v1052_v36 = vadd.f32 %v1050_v35, %v1046_v32 }
0x11e7   :  { %1809 = vtanh.f32 %v1048_v0  ;;  %v1525_v17 = vmul.f32 -1.442695, %v1048_v0 }
0x11e8   :  { %1811 = vtanh.f32 %v1052_v36  ;;  %v1524_v25 = vmul.f32 -1.442695, %v1052_v36 }
0x11e9   :  { %1813 = vpow2.f32 %v1525_v17 }
0x11ea   :  { %1815 = vpow2.f32 %v1524_v25 }
0x11f1   :  { %v1810_v12 = vpop.eup %1809 }
0x11f2   :  { %v1812_v15 = vpop.eup %1811  ;;  %1086 = vrot.lane.b32.xlu0 %v1810_v12, %s1926_s18 }
0x11f3   :  { %1062 = vrot.lane.b32.xlu1 %v1812_v15, %s1926_s18  ;;  %v1814_v26 = vpop.eup %1813 }
0x11f4   :  { %v1816_v29 = vpop.eup %1815  ;;  %v1080_v37 = vadd.f32 1.0, %v1814_v26 }
0x11f5   :  { %v1056_v38 = vadd.f32 1.0, %v1816_v29 }
0x11f6   :  { %1817 = vrcp.f32 %v1080_v37 }
0x11f7   :  { %1819 = vrcp.f32 %v1056_v38 }
0x1200   :  { %v1818_v40 = vpop.eup %1817 }
0x1201   :  { %v1820_v43 = vpop.eup %1819  ;;  %v1084_v47 = vmul.f32 %v1818_v40, %v956_v14 }
0x1202   :  { %v1060_v49 = vmul.f32 %v1820_v43, %v932_v4 }
0x1264   :  { %v1087_v42 = vpop.permute.xlu0 %1086 }
0x1265   :  { %v1089_v34 = vmul.f32 %v1818_v40, %v1087_v42  ;;  %v1063_v45 = vpop.permute.xlu1 %1062 }
0x1266   :  { %v1065_v46 = vmul.f32 %v1820_v43, %v1063_v45 }
0x1267   :  { %1091 = vrot.lane.b32.xlu0 %v1089_v34, %s1925_s29 }
0x1268   :  { %1067 = vrot.lane.b32.xlu1 %v1065_v46, %s1925_s29 }
0x12d9   :  { %v1092_v48 = vpop.permute.xlu0 %1091 }
0x12da   :  { %v1094_v50 = vadd.f32 %v1092_v48, %v1084_v47  ;;  %v1068_v51 = vpop.permute.xlu1 %1067 }
0x12db   :  { %v1070_v52 = vadd.f32 %v1068_v51, %v1060_v49 }
0x12dc   :  { %1821 = vtanh.f32 %v1094_v50 }
0x12dd   :  { %1823 = vtanh.f32 %v1070_v52 }
0x12e6   :  { %v1822_v53 = vpop.eup %1821 }
0x12e7   :  { %v1824_v54 = vpop.eup %1823  ;;  %1097 = vrot.lane.b32.xlu0 %v1822_v53, %s1926_s18 }
0x12e8   :  { %1073 = vrot.lane.b32.xlu1 %v1824_v54, %s1926_s18  ;;  %v1370_v54 = vld [vmem:[%s2340_s6] sm:$0xff] }
0x1359   :  { %v1098_v55 = vpop.permute.xlu0 %1097 }
0x135a   :  { %v2231_v56 = vmul.f32 %v1818_v40, %v1098_v55  ;;  %v1074_v57 = vpop.permute.xlu1 %1073  ;;  %v1371_v55 = vld [vmem:[%s2340_s6 + $0x8] sm:$0xff] }
0x135b   :  { %v1076_v58 = vmul.f32 %v1820_v43, %v1074_v57  ;;  %v1703_v57 = vpack.c.bf16 %v1371_v55, %v1370_v54 }
0x135c   :  { %1110 = vrot.lane.b32.xlu0 %v2231_v56, %s1926_s18 }
0x135d   :  { %1107 = vrot.lane.b32.xlu1 %v1076_v58, %s1925_s29  ;;  %1704 = vmatprep.subr.bf16.mxu0 %v1703_v57 }
0x13ce   :  { %v1111_v59 = vpop.permute.xlu0 %1110 }
0x13cf   :  { %v1108_v62 = vpop.permute.xlu1 %1107 }
0x13d0   :  { %v1113_v63 = vsel %vm160_vm1, %v1108_v62, %v1111_v59 }
0x13d1   :  { %1526 = vmatmul.mubr.msk.f32.vlgmr.msra.gmra.mrb[8].mxu0 %vm173_vm2, %v1113_v63 }
0x13d2   :  { %1706 = vmatpush3.bf16.msra.mxu0 %v1703_v57 }
0x14a4   :  { %v1183_v1 = vpop.f32.mrb[8].mxu0 }
0x14a5   :  { %v1184_v2 = vadd.f32 %v1183_v1, %v2074_v39  ;;  %v1185_v5 = vpop.f32.mrb[9].mxu0 }
0x14a6   :  { %v1186_v6 = vadd.f32 %v1185_v5, %v2093_v61 }
0x14a7   :  { %v1190_v7 = vadd.f32 %v1188_v3, %v1184_v2 }
0x14a8   :  { %1825 = vtanh.f32 %v1186_v6  ;;  %v1528_v11 = vmul.f32 -1.442695, %v1186_v6 }
0x14a9   :  { %1827 = vtanh.f32 %v1190_v7  ;;  %v1527_v13 = vmul.f32 -1.442695, %v1190_v7 }
0x14aa   :  { %1829 = vpow2.f32 %v1528_v11 }
0x14ab   :  { %1831 = vpow2.f32 %v1527_v13 }
0x14b2   :  { %v1826_v9 = vpop.eup %1825 }
0x14b3   :  { %v1828_v10 = vpop.eup %1827  ;;  %1224 = vrot.lane.b32.xlu0 %v1826_v9, %s1926_s18 }
0x14b4   :  { %1200 = vrot.lane.b32.xlu1 %v1828_v10, %s1926_s18  ;;  %v1830_v14 = vpop.eup %1829 }
0x14b5   :  { %v1832_v39 = vpop.eup %1831  ;;  %v1218_v16 = vadd.f32 1.0, %v1830_v14 }
0x14b6   :  { %v1194_v33 = vadd.f32 1.0, %v1832_v39 }
0x14b7   :  { %1833 = vrcp.f32 %v1218_v16 }
0x14b8   :  { %1835 = vrcp.f32 %v1194_v33 }
0x14c1   :  { %v1834_v4 = vpop.eup %1833 }
0x14c2   :  { %v1836_v20 = vpop.eup %1835  ;;  %v1222_v27 = vmul.f32 %v1834_v4, %v1094_v50 }
0x14c3   :  { %v1198_v30 = vmul.f32 %v1836_v20, %v1070_v52 }
0x1525   :  { %v1225_v18 = vpop.permute.xlu0 %1224 }
0x1526   :  { %v1227_v21 = vmul.f32 %v1834_v4, %v1225_v18  ;;  %v1201_v23 = vpop.permute.xlu1 %1200 }
0x1527   :  { %v1203_v24 = vmul.f32 %v1836_v20, %v1201_v23 }
0x1528   :  { %1229 = vrot.lane.b32.xlu0 %v1227_v21, %s1925_s29 }
0x1529   :  { %1205 = vrot.lane.b32.xlu1 %v1203_v24, %s1925_s29 }
0x159a   :  { %v1230_v28 = vpop.permute.xlu0 %1229 }
0x159b   :  { %v1232_v31 = vadd.f32 %v1230_v28, %v1222_v27  ;;  %v1206_v32 = vpop.permute.xlu1 %1205 }
0x159c   :  { %v1208_v35 = vadd.f32 %v1206_v32, %v1198_v30 }
0x159d   :  { %1837 = vtanh.f32 %v1232_v31 }
0x159e   :  { %1839 = vtanh.f32 %v1208_v35 }
0x15a7   :  { %v1838_v8 = vpop.eup %1837 }
0x15a8   :  { %v1840_v0 = vpop.eup %1839  ;;  %1235 = vrot.lane.b32.xlu0 %v1838_v8, %s1926_s18 }
0x15a9   :  { %1211 = vrot.lane.b32.xlu1 %v1840_v0, %s1926_s18 }
0x161a   :  { %v1236_v36 = vpop.permute.xlu0 %1235 }
0x161b   :  { %v1238_v12 = vmul.f32 %v1834_v4, %v1236_v36  ;;  %v1212_v15 = vpop.permute.xlu1 %1211 }
0x161c   :  { %v1214_v17 = vmul.f32 %v1836_v20, %v1212_v15 }
0x161d   :  { %1248 = vrot.lane.b32.xlu0 %v1238_v12, %s1926_s18 }
0x161e   :  { %1245 = vrot.lane.b32.xlu1 %v1214_v17, %s1925_s29 }
0x168f   :  { %v1249_v25 = vpop.permute.xlu0 %1248 }
0x1690   :  { %v1246_v26 = vpop.permute.xlu1 %1245 }
0x1691   :  { %v1251_v29 = vsel %vm160_vm1, %v1246_v26, %v1249_v25  ;;  %1354 = vst.msk [vmem:[#allocation6] sm:$0x3] %vm415_vm3, %v1246_v26 }
0x1692   :  { %1529 = vmatmul.mubr.msk.f32.vlgmr.msra.gmra.mrb[8].mxu1 %vm173_vm2, %v1251_v29 }
0x1765   :  { %v1321_v37 = vpop.f32.mrb[8].mxu1 }
0x1766   :  { %v1322_v38 = vpop.f32.mrb[9].mxu1 }
0x1767   :  { %v1323_v40 = vadd.f32 %v1322_v38, %v2093_v61 }
0x1769   :  { %1841 = vtanh.f32 %v1323_v40  ;;  %v1530_v43 = vmul.f32 -1.442695, %v1323_v40 }
0x176b   :  { %1843 = vpow2.f32 %v1530_v43 }
0x1773   :  { %v1842_v42 = vpop.eup %1841 }
0x1774   :  { %1334 = vrot.lane.b32.xlu1 %v1842_v42, %s1926_s18 }
0x1775   :  { %v1844_v34 = vpop.eup %1843 }
0x1776   :  { %v1328_v45 = vadd.f32 1.0, %v1844_v34 }
0x1778   :  { %1845 = vrcp.f32 %v1328_v45 }
0x1782   :  { %v1846_v46 = vpop.eup %1845 }
0x1783   :  { %v1332_v61 = vmul.f32 %v1846_v46, %v1232_v31 }
0x17e6   :  { %v1335_v47 = vpop.permute.xlu1 %1334 }
0x17e7   :  { %v1337_v48 = vmul.f32 %v1846_v46, %v1335_v47 }
0x17e9   :  { %1339 = vrot.lane.b32.xlu0 %v1337_v48, %s1925_s29 }
0x17ed   :  { %412 = vrot.lane.b32.xlu0 %v2108_v41, %s1925_s29 }
0x17f1   :  { %689 = vrot.lane.b32.xlu0 %v2158_v60, %s1925_s29 }
0x17f5   :  { %964 = vrot.lane.b32.xlu0 %v2207_v22, %s1925_s29 }
0x17f9   :  { %1240 = vrot.lane.b32.xlu0 %v1238_v12, %s1925_s29 }
0x17fd   :  { %1356 = vrot.lane.b32.xlu0 %v1208_v35, %s1927_s2 }
0x185b   :  { %v1340_v49 = vpop.permute.xlu0 %1339 }
0x185c   :  { %v1342_v50 = vadd.f32 %v1340_v49, %v1332_v61 }
0x185e   :  { %1847 = vtanh.f32 %v1342_v50 }
0x185f   :  { %v413_v51 = vpop.permute.xlu0 %412 }
0x1860   :  { %416 = vst.msk [vmem:[#allocation2] sm:$0x3] %vm415_vm3, %v413_v51 }
0x1863   :  { %v690_v52 = vpop.permute.xlu0 %689 }
0x1864   :  { %692 = vst.msk [vmem:[#allocation2 + $0x4] sm:$0x3] %vm415_vm3, %v690_v52 }
0x1867   :  { %v965_v41 = vpop.permute.xlu0 %964 }
0x1868   :  { %v1848_v60 = vpop.eup %1847  ;;  %967 = vst.msk [vmem:[#allocation2 + $0x8] sm:$0x3] %vm415_vm3, %v965_v41 }
0x1869   :  { %1345 = vrot.lane.b32.xlu1 %v1848_v60, %s1926_s18 }
0x186b   :  { %v1241_v22 = vpop.permute.xlu0 %1240 }
0x186c   :  { %1243 = vst.msk [vmem:[#allocation2 + $0xc] sm:$0x3] %vm415_vm3, %v1241_v22 }
0x186d   :  { %551 = vrot.lane.b32.xlu1 %v2133_v19, %s1925_s29  ;;  %v1372_v19 = vld [vmem:[%s2340_s6 + $0x10] sm:$0xff] }
0x186f   :  { %v1357_v53 = vpop.permute.xlu0 %1356 }
0x1870   :  { %1359 = vst.msk [vmem:[#allocation7] sm:$0x3] %vm415_vm3, %v1357_v53 }
0x1871   :  { %825 = vrot.lane.b32.xlu1 %v2183_v44, %s1925_s29  ;;  %v1373_v44 = vld [vmem:[%s2340_s6 + $0x18] sm:$0xff]  ;;  %s1928_s6 = smov [#allocation6]  }
0x1872   :  { %s1472_s28 = sshll.u32 %s1928_s6, 4  ;;  %s1473_s28 = int_to_ptr.vmem [resolvable:$true] %s1472_s28 }
0x1873   :  { %s1871_s11 = scalar_lea.vmem %s1473_s28, 64  ;;  %p1876_p9 = scmp.lt.s32.totalorder %s1473_s28, %s1473_s28 }
0x1874   :  { %p1872_p8 = scmp.ne.s32.totalorder %s1473_s28, %s1871_s11  ;;  %p1877_p10 = scmp.lt.s32.totalorder %s1871_s11, %s1871_s11 }
0x1875   :  { %1102 = vrot.lane.b32.xlu1 %v2231_v56, %s1925_s29  ;;  %v1707_v56 = vpack.c.bf16 %v1373_v44, %v1372_v19 }
0x1876   :  { %p1878_p11 = por %p1877_p10, %p1876_p9 }
0x1877   :  { %1708 = vmatprep.subr.bf16.mxu0 %v1707_v56 }
0x1878   :  { %1710 = vmatpush3.bf16.msra.mxu0 %v1707_v56  ;;  %p1879_p12 = pnand %p1878_p11, %p1872_p8 }
0x18db   :  { %v1346_v58 = vpop.permute.xlu1 %1345 }
0x18dc   :  { %v1348_v59 = vmul.f32 %v1846_v46, %v1346_v58 }
0x18de   :  { %1350 = vrot.lane.b32.xlu1 %v1348_v59, %s1925_s29 }
0x18df   :  { %v552_v62 = vpop.permute.xlu1 %551 }
0x18e0   :  { %554 = vst.msk [vmem:[#allocation2 + $0x2] sm:$0x3] %vm415_vm3, %v552_v62 }
0x18e2   :  { %1363 = vrot.lane.b32.xlu1 %v1342_v50, %s1927_s2 }
0x18e3   :  { %v826_v63 = vpop.permute.xlu1 %825 }
0x18e4   :  { %828 = vst.msk [vmem:[#allocation2 + $0x6] sm:$0x3] %vm415_vm3, %v826_v63 }
0x18e7   :  { %v1103_v1 = vpop.permute.xlu1 %1102 }
0x18e8   :  { %1105 = vst.msk [vmem:[#allocation2 + $0xa] sm:$0x3] %vm415_vm3, %v1103_v1 }
0x18eb   :  { %v1368_v2 = vld [vmem:[#allocation2] sm:$0xff] }
0x18ec   :  { %1556 = vmatprep.mubr.msk.f32.mxu0 %vm160_vm1, %v1368_v2 }
0x1950   :  { %v1351_v3 = vpop.permute.xlu1 %1350 }
0x1951   :  { %1353 = vst.msk [vmem:[#allocation2 + $0xe] sm:$0x3] %vm415_vm3, %v1351_v3  ;;  %1361 = vst.msk [vmem:[#allocation6 + $0x2] sm:$0x3] %vm415_vm3, %v1351_v3 }
0x1954   :  { %v1364_v5 = vpop.permute.xlu1 %1363 }
0x1955   :  { %1367 = vst.msk [vmem:[#allocation7 + $0x2] sm:$0x3] %vm415_vm3, %v1364_v5 }
0x1958   :  { %v1369_v6 = vld [vmem:[#allocation2 + $0x8] sm:$0xff] }
0x1959   :  { %1557 = vmatmul.mubr.msk.f32.vlgmr.msra.gmra.mrb[10].mxu0 %vm160_vm1, %v1369_v6 }
0x195a   :  { %1882 = shalt.err (!%p1879_p12)
}
0x195b   :  { %s1883_s14 = scalar_lea.hbm %s2343_s9, 64 }
0x195c   :  { %p1884_p13 = scmp.ne.s32.totalorder %s2343_s9, %s1883_s14  ;;  %p1887_p0 = scmp.lt.u32.totalorder %s1883_s14, %s2343_s9 }
0x195e   :  { %p1889_p1 = pnand %p1887_p0, %p1884_p13 }
0x1960   :  { %1892 = shalt.err (!%p1889_p1)
}
0x1961   :  { %s1930_s1 = smov 2   ;;  %s1893_s4 = scalar_lea.vmem %s1485_s30, 64 }
0x1962   :  { %1478 = dma.vmem_to_hbm [thread:$0]  %s1473_s28, 64, %s2343_s9, [#allocation5], %s1925_s29, %s1925_s29, %s1930_s1  }
0x1963   :  { %p1894_p2 = scmp.ne.s32.totalorder %s1485_s30, %s1893_s4  ;;  %p1898_p3 = scmp.lt.s32.totalorder %s1485_s30, %s1485_s30 }
0x1964   :  { %p1899_p4 = scmp.lt.s32.totalorder %s1893_s4, %s1893_s4 }
0x1966   :  { %p1900_p5 = por %p1899_p4, %p1898_p3 }
0x1968   :  { %p1901_p6 = pnand %p1900_p5, %p1894_p2 }
0x196a   :  { %1904 = shalt.err (!%p1901_p6)
}
0x196b   :  { %s1905_s20 = scalar_lea.hbm %s2344_s10, 64 }
0x196c   :  { %p1906_p7 = scmp.ne.s32.totalorder %s2344_s10, %s1905_s20  ;;  %p1909_p8 = scmp.lt.u32.totalorder %s1905_s20, %s2344_s10 }
0x196e   :  { %p1911_p9 = pnand %p1909_p8, %p1906_p7 }
0x1970   :  { %1914 = shalt.err (!%p1911_p9)
}
0x1971   :  { %1490 = dma.vmem_to_hbm [thread:$0]  %s1485_s30, 64, %s2344_s10, [#allocation8], %s1925_s29, %s1925_s29, %s1930_s1   ;;  %vm1462_vm4 = vcmask 31744  }
0x1972   :  { %v1531_v7 = vld [vmem:[%s2341_s7] ss:$0 sm:$0xff] }
0x1a2c   :  { %v1558_v9 = vpop.f32.mrb[10].mxu0 }
0x1a2d   :  { %v1459_v10 = vadd.f32 %v1558_v9, %v1531_v7  ;;  %v1453_v11 = vpop.f32.mrb[11].mxu0 }
0x1a2e   :  { %v1454_v13 = vadd.f32 %v1531_v7, %v1453_v11 }
0x1a2f   :  { %1464 = vst.msk [vmem:[%s2342_s8 + $0x8] sm:$0xff] %vm1462_vm4, %v1459_v10 }
0x1a30   :  { %1463 = vst.msk [vmem:[%s2342_s8] sm:$0xff] %vm1462_vm4, %v1454_v13 }
0x1a31   :  { %1917 = dma.done.wait [#allocation5], 64  }
0x1a32   :  { %1918 = vsyncadd [#allocation5], 4294967232 }
0x1a33   :  { %1919 = dma.done.wait [#allocation8], 64  }
0x1a34   :  { %1920 = vsyncadd [#allocation8], 4294967232 }
0x1a35   :  { %1499 = vsyncpa [#allocation4], 1 }
0x1a36   :  { %1500 = vsyncpa [#allocation5], 1 }
0x1a37   :  { %1501 = vsyncpa [#allocation8], 1 }

</bundles_post_ra>
